<compile_context>
chip_gen: v7x
topology: tpu7x:2x2x1
jax: 0.10.0
libtpu: 0.0.40
codegen_flags: <defaults>
</compile_context>

<pallas_src>
import math

import jax
import jax.numpy as jnp
from jax.experimental import pallas as pl
from jax.experimental.pallas import tpu as pltpu

# ----------------- model hyper-parameters (small test shapes) ----------------
B = 2              # batch
S = 8              # sequence length
D_MODEL = 32       # d_model
NUM_HEADS = 4      # nhead
HEAD_DIM = D_MODEL // NUM_HEADS
DIM_FF = 64        # dim_feedforward (small for the test)
NUM_LAYERS = 2     # num_encoder_layers
NUM_LABELS = 4
VOCAB_SIZE = 100   # id range used by the test (stand-in for the BERT vocab)
EMB_ROWS = 128     # embedding table padded to a lane-friendly row count
LN_EPS = 1e-5
ATTN_SCALE = 1.0 / math.sqrt(HEAD_DIM)


def _layer_norm(x, gamma, beta):
    # nn.LayerNorm: biased variance, eps inside the sqrt.  Single-pass stats
    # (E[x^2] - mu^2) halve the dependent lane reductions per call.
    mu = jnp.mean(x, axis=-1, keepdims=True)
    var = jnp.mean(x * x, axis=-1, keepdims=True) - mu * mu
    return (x - mu) * jax.lax.rsqrt(var + LN_EPS) * gamma + beta


# --------------------------- single fused kernel ------------------------------
def fused_transformer_kernel(ids_ref, emb_ref,
                             wqkv_ref, bqkv_ref, wo_ref, bo_ref,
                             g1_ref, be1_ref, g2_ref, be2_ref,
                             w1_ref, bf1_ref, w2_ref, bf2_ref,
                             wc_ref, bc_ref, o_ref):
    f32 = jnp.float32

    # ---- embedding lookup as a one-hot MXU matmul: (B*S,V) @ (V,D) ----------
    ids = ids_ref[...]                                          # (B*S, 1) int32
    vocab_iota = jax.lax.broadcasted_iota(jnp.int32, (B * S, EMB_ROWS), 1)
    onehot = jnp.where(vocab_iota == ids, 1.0, 0.0).astype(f32)  # (B*S, V)
    x = jnp.dot(onehot, emb_ref[...], preferred_element_type=f32)  # (B*S, D)

    # Positional encoding is discarded by the reference forward; dropout = id.

    for l in range(NUM_LAYERS):                                 # static unroll
        # ---- multi-head self-attention (flattened 2-D projections) ----------
        qkv = jnp.dot(x, wqkv_ref[l], preferred_element_type=f32) + bqkv_ref[l]
        q = qkv[:, 0 * D_MODEL:1 * D_MODEL]
        k = qkv[:, 1 * D_MODEL:2 * D_MODEL]
        v = qkv[:, 2 * D_MODEL:3 * D_MODEL]

        def split_heads(t):
            # (B*S, D) -> (H*B, S, Hd): heads stacked along the LEADING axis so
            # attention is ONE batched einsum + ONE softmax for all heads.
            return jnp.concatenate(
                [t[:, h * HEAD_DIM:(h + 1) * HEAD_DIM].reshape(B, S, HEAD_DIM)
                 for h in range(NUM_HEADS)], axis=0)

        qh, kh, vh = split_heads(q), split_heads(k), split_heads(v)

        s = jnp.einsum('bqd,bkd->bqk', qh, kh,
                       preferred_element_type=f32) * ATTN_SCALE   # (H*B,S,S)
        s = s - jnp.max(s, axis=-1, keepdims=True)
        p = jnp.exp(s)
        # approx reciprocal runs on the EUP slot -> divide off the VALU path
        p = p * pl.reciprocal(jnp.sum(p, axis=-1, keepdims=True), approx=True)
        ah = jnp.einsum('bqk,bkd->bqd', p, vh,
                        preferred_element_type=f32)               # (H*B,S,Hd)

        # (H*B, S, Hd) -> (B*S, D): head h goes back to lane block h.
        attn = jnp.concatenate([ah[h * B:(h + 1) * B]
                                for h in range(NUM_HEADS)], axis=-1)  # (B,S,D)
        attn = attn.reshape(B * S, D_MODEL)
        attn = jnp.dot(attn, wo_ref[l], preferred_element_type=f32) + bo_ref[l]

        # ---- post-norm residual blocks ---------------------------------------
        x1 = _layer_norm(x + attn, g1_ref[l], be1_ref[l])
        h1 = jnp.dot(x1, w1_ref[l], preferred_element_type=f32) + bf1_ref[l]
        h1 = jnp.maximum(h1, 0.0)                                 # relu
        ff = jnp.dot(h1, w2_ref[l], preferred_element_type=f32) + bf2_ref[l]
        x = _layer_norm(x1 + ff, g2_ref[l], be2_ref[l])

    # ---- mean over seq + classifier + softmax(dim=1) -------------------------
    pooled = jnp.mean(x.reshape(B, S, D_MODEL), axis=1)           # (B, D)
    logits = jnp.dot(pooled, wc_ref[...], preferred_element_type=f32) + bc_ref[...]
    logits = logits - jnp.max(logits, axis=-1, keepdims=True)
    e = jnp.exp(logits)
    # exact divide here (only B*NUM_LABELS values) so rows sum to 1 tightly
    o_ref[...] = (e / jnp.sum(e, axis=-1, keepdims=True)).astype(o_ref.dtype)


def transformer_forward(input_ids, params):
    vmem = pl.BlockSpec(memory_space=pltpu.MemorySpace.VMEM)
    ids = input_ids.reshape(B * S, 1).astype(jnp.int32)
    args = (ids, params['emb'],
            params['wqkv'], params['bqkv'], params['wo'], params['bo'],
            params['g1'], params['be1'], params['g2'], params['be2'],
            params['w1'], params['bf1'], params['w2'], params['bf2'],
            params['wc'], params['bc'])
    return pl.pallas_call(
        fused_transformer_kernel,
        out_shape=jax.ShapeDtypeStruct((B, NUM_LABELS), jnp.float32),
        in_specs=[vmem] * len(args),
        out_specs=vmem,
    )(*args)


# ------------------------------ pure-JAX reference ----------------------------
def transformer_reference(input_ids, params):
    x = jnp.take(params['emb'], input_ids, axis=0)                # (B, S, D)
    for l in range(NUM_LAYERS):
        qkv = x @ params['wqkv'][l] + params['bqkv'][l]
        q, k, v = jnp.split(qkv, 3, axis=-1)

        def heads(t):
            return t.reshape(B, S, NUM_HEADS, HEAD_DIM).transpose(0, 2, 1, 3)

        q, k, v = heads(q), heads(k), heads(v)
        s = jnp.einsum('bhqd,bhkd->bhqk', q, k) * ATTN_SCALE
        p = jax.nn.softmax(s, axis=-1)
        a = jnp.einsum('bhqk,bhkd->bhqd', p, v).transpose(0, 2, 1, 3)
        a = a.reshape(B, S, D_MODEL) @ params['wo'][l] + params['bo'][l]
        x = _layer_norm(x + a, params['g1'][l], params['be1'][l])
        h = jax.nn.relu(x @ params['w1'][l] + params['bf1'][l])
        ff = h @ params['w2'][l] + params['bf2'][l]
        x = _layer_norm(x + ff, params['g2'][l], params['be2'][l])
    pooled = x.mean(axis=1)
    logits = pooled @ params['wc'] + params['bc']
    return jax.nn.softmax(logits, axis=-1)


# -------------------------------- parameter init ------------------------------
def init_params(key):
    def nrm(k, shape, scale=0.02):
        return (scale * jax.random.normal(k, shape)).astype(jnp.float32)

    ks = jax.random.split(key, 6)
    L = NUM_LAYERS
    return {
        'emb': nrm(ks[0], (EMB_ROWS, D_MODEL), 1.0),
        'wc': nrm(ks[1], (D_MODEL, NUM_LABELS)),
        'bc': jnp.zeros((1, NUM_LABELS), jnp.float32),
        # per-layer weights stacked along a leading layer axis
        'wqkv': nrm(ks[2], (L, D_MODEL, 3 * D_MODEL)),
        'bqkv': jnp.zeros((L, 1, 3 * D_MODEL), jnp.float32),
        'wo': nrm(ks[3], (L, D_MODEL, D_MODEL)),
        'bo': jnp.zeros((L, 1, D_MODEL), jnp.float32),
        'g1': jnp.ones((L, 1, D_MODEL), jnp.float32),
        'be1': jnp.zeros((L, 1, D_MODEL), jnp.float32),
        'g2': jnp.ones((L, 1, D_MODEL), jnp.float32),
        'be2': jnp.zeros((L, 1, D_MODEL), jnp.float32),
        'w1': nrm(ks[4], (L, D_MODEL, DIM_FF)),
        'bf1': jnp.zeros((L, 1, DIM_FF), jnp.float32),
        'w2': nrm(ks[5], (L, DIM_FF, D_MODEL)),
        'bf2': jnp.zeros((L, 1, D_MODEL), jnp.float32),
    }


if __name__ == "__main__":
    key = jax.random.PRNGKey(0)
    k_ids, k_params = jax.random.split(key)
    input_ids = jax.random.randint(k_ids, (B, S), 0, VOCAB_SIZE, dtype=jnp.int32)
    params = init_params(k_params)

    out = jax.block_until_ready(jax.jit(transformer_forward)(input_ids, params))
    ref = transformer_reference(input_ids, params)

    assert out.shape == (B, NUM_LABELS)
    # rows of a softmax sum to 1 (final softmax uses an exact divide)
    assert bool(jnp.allclose(jnp.sum(out, axis=1), 1.0, atol=1e-5))
    # matches the pure-JAX reference (loose tol: approx reciprocal in attention)
    assert bool(jnp.allclose(out, ref, atol=2e-2))
    print("KERNEL_OK")
</pallas_src>

<mosaic_0001>
module attributes {stable_mosaic.version = 11 : i64} {
  func.func @fused_transformer_kernel(%arg0: memref<16x1xi32, #tpu.memory_space<vmem>>, %arg1: memref<128x32xf32, #tpu.memory_space<vmem>>, %arg2: memref<2x32x96xf32, #tpu.memory_space<vmem>>, %arg3: memref<2x1x96xf32, #tpu.memory_space<vmem>>, %arg4: memref<2x32x32xf32, #tpu.memory_space<vmem>>, %arg5: memref<2x1x32xf32, #tpu.memory_space<vmem>>, %arg6: memref<2x1x32xf32, #tpu.memory_space<vmem>>, %arg7: memref<2x1x32xf32, #tpu.memory_space<vmem>>, %arg8: memref<2x1x32xf32, #tpu.memory_space<vmem>>, %arg9: memref<2x1x32xf32, #tpu.memory_space<vmem>>, %arg10: memref<2x32x64xf32, #tpu.memory_space<vmem>>, %arg11: memref<2x1x64xf32, #tpu.memory_space<vmem>>, %arg12: memref<2x64x32xf32, #tpu.memory_space<vmem>>, %arg13: memref<2x1x32xf32, #tpu.memory_space<vmem>>, %arg14: memref<32x4xf32, #tpu.memory_space<vmem>>, %arg15: memref<1x4xf32, #tpu.memory_space<vmem>>, %arg16: memref<2x4xf32, #tpu.memory_space<vmem>>) attributes {dimension_semantics = [], scalar_prefetch = 0 : i64, scratch_operands = 0 : i64, tpu.core_type = #tpu.core_type<tc>} {
    %c0 = arith.constant 0 : index
    %c0_0 = arith.constant 0 : index
    %0 = vector.load %arg0[%c0, %c0_0] : memref<16x1xi32, #tpu.memory_space<vmem>>, vector<16x1xi32>
    %1 = tpu.iota {dimensions = array<i32: 1>} : vector<16x128xi32>
    %2 = vector.broadcast %0 : vector<16x1xi32> to vector<16x128xi32>
    %3 = arith.cmpi eq, %1, %2 : vector<16x128xi32>
    %cst = arith.constant 1.000000e+00 : f32
    %cst_1 = arith.constant 0.000000e+00 : f32
    %4 = vector.broadcast %cst : f32 to vector<16x128xf32>
    %5 = vector.broadcast %cst_1 : f32 to vector<16x128xf32>
    %6 = arith.select %3, %4, %5 : vector<16x128xi1>, vector<16x128xf32>
    %c0_2 = arith.constant 0 : index
    %c0_3 = arith.constant 0 : index
    %7 = vector.load %arg1[%c0_2, %c0_3] : memref<128x32xf32, #tpu.memory_space<vmem>>, vector<128x32xf32>
    %cst_4 = arith.constant dense<0.000000e+00> : vector<16x32xf32>
    %8 = tpu.matmul %6, %7, %cst_4 {dimension_numbers = #tpu.dot_dimension_numbers<[1], [0], [0], [1], [0, 0, 1, 1], [], []>} : vector<16x128xf32>, vector<128x32xf32>, vector<16x32xf32> -> vector<16x32xf32>
    %c0_5 = arith.constant 0 : index
    %c0_6 = arith.constant 0 : index
    %c0_7 = arith.constant 0 : index
    %9 = vector.load %arg2[%c0_5, %c0_6, %c0_7] : memref<2x32x96xf32, #tpu.memory_space<vmem>>, vector<1x32x96xf32>
    %10 = vector.shape_cast %9 : vector<1x32x96xf32> to vector<32x96xf32>
    %cst_8 = arith.constant dense<0.000000e+00> : vector<16x96xf32>
    %11 = tpu.matmul %8, %10, %cst_8 {dimension_numbers = #tpu.dot_dimension_numbers<[1], [0], [0], [1], [0, 0, 1, 1], [], []>} : vector<16x32xf32>, vector<32x96xf32>, vector<16x96xf32> -> vector<16x96xf32>
    %c0_9 = arith.constant 0 : index
    %c0_10 = arith.constant 0 : index
    %c0_11 = arith.constant 0 : index
    %12 = vector.load %arg3[%c0_9, %c0_10, %c0_11] : memref<2x1x96xf32, #tpu.memory_space<vmem>>, vector<1x1x96xf32>
    %13 = vector.shape_cast %12 : vector<1x1x96xf32> to vector<1x96xf32>
    %14 = vector.broadcast %13 : vector<1x96xf32> to vector<16x96xf32>
    %15 = arith.addf %11, %14 : vector<16x96xf32>
    %16 = vector.extract_strided_slice %15 {offsets = [0, 0], sizes = [16, 32], strides = [1, 1]} : vector<16x96xf32> to vector<16x32xf32>
    %17 = vector.extract_strided_slice %15 {offsets = [0, 32], sizes = [16, 32], strides = [1, 1]} : vector<16x96xf32> to vector<16x32xf32>
    %18 = vector.extract_strided_slice %15 {offsets = [0, 64], sizes = [16, 32], strides = [1, 1]} : vector<16x96xf32> to vector<16x32xf32>
    %19 = vector.extract_strided_slice %16 {offsets = [0, 0], sizes = [16, 8], strides = [1, 1]} : vector<16x32xf32> to vector<16x8xf32>
    %20 = vector.shape_cast %19 : vector<16x8xf32> to vector<2x8x8xf32>
    %21 = vector.extract_strided_slice %16 {offsets = [0, 8], sizes = [16, 8], strides = [1, 1]} : vector<16x32xf32> to vector<16x8xf32>
    %22 = vector.shape_cast %21 : vector<16x8xf32> to vector<2x8x8xf32>
    %23 = vector.extract_strided_slice %16 {offsets = [0, 16], sizes = [16, 8], strides = [1, 1]} : vector<16x32xf32> to vector<16x8xf32>
    %24 = vector.shape_cast %23 : vector<16x8xf32> to vector<2x8x8xf32>
    %25 = vector.extract_strided_slice %16 {offsets = [0, 24], sizes = [16, 8], strides = [1, 1]} : vector<16x32xf32> to vector<16x8xf32>
    %26 = vector.shape_cast %25 : vector<16x8xf32> to vector<2x8x8xf32>
    %27 = tpu.concatenate %20, %22, %24, %26 in 0 : vector<2x8x8xf32>, vector<2x8x8xf32>, vector<2x8x8xf32>, vector<2x8x8xf32> -> vector<8x8x8xf32>
    %28 = vector.extract_strided_slice %17 {offsets = [0, 0], sizes = [16, 8], strides = [1, 1]} : vector<16x32xf32> to vector<16x8xf32>
    %29 = vector.shape_cast %28 : vector<16x8xf32> to vector<2x8x8xf32>
    %30 = vector.extract_strided_slice %17 {offsets = [0, 8], sizes = [16, 8], strides = [1, 1]} : vector<16x32xf32> to vector<16x8xf32>
    %31 = vector.shape_cast %30 : vector<16x8xf32> to vector<2x8x8xf32>
    %32 = vector.extract_strided_slice %17 {offsets = [0, 16], sizes = [16, 8], strides = [1, 1]} : vector<16x32xf32> to vector<16x8xf32>
    %33 = vector.shape_cast %32 : vector<16x8xf32> to vector<2x8x8xf32>
    %34 = vector.extract_strided_slice %17 {offsets = [0, 24], sizes = [16, 8], strides = [1, 1]} : vector<16x32xf32> to vector<16x8xf32>
    %35 = vector.shape_cast %34 : vector<16x8xf32> to vector<2x8x8xf32>
    %36 = tpu.concatenate %29, %31, %33, %35 in 0 : vector<2x8x8xf32>, vector<2x8x8xf32>, vector<2x8x8xf32>, vector<2x8x8xf32> -> vector<8x8x8xf32>
    %37 = vector.extract_strided_slice %18 {offsets = [0, 0], sizes = [16, 8], strides = [1, 1]} : vector<16x32xf32> to vector<16x8xf32>
    %38 = vector.shape_cast %37 : vector<16x8xf32> to vector<2x8x8xf32>
    %39 = vector.extract_strided_slice %18 {offsets = [0, 8], sizes = [16, 8], strides = [1, 1]} : vector<16x32xf32> to vector<16x8xf32>
    %40 = vector.shape_cast %39 : vector<16x8xf32> to vector<2x8x8xf32>
    %41 = vector.extract_strided_slice %18 {offsets = [0, 16], sizes = [16, 8], strides = [1, 1]} : vector<16x32xf32> to vector<16x8xf32>
    %42 = vector.shape_cast %41 : vector<16x8xf32> to vector<2x8x8xf32>
    %43 = vector.extract_strided_slice %18 {offsets = [0, 24], sizes = [16, 8], strides = [1, 1]} : vector<16x32xf32> to vector<16x8xf32>
    %44 = vector.shape_cast %43 : vector<16x8xf32> to vector<2x8x8xf32>
    %45 = tpu.concatenate %38, %40, %42, %44 in 0 : vector<2x8x8xf32>, vector<2x8x8xf32>, vector<2x8x8xf32>, vector<2x8x8xf32> -> vector<8x8x8xf32>
    "tpu.trace_start"() <{level = 10 : i32, message = "bqd,bkd->bqk"}> : () -> ()
    %cst_12 = arith.constant dense<0.000000e+00> : vector<8x8x8xf32>
    %46 = tpu.matmul %27, %36, %cst_12 {dimension_numbers = #tpu.dot_dimension_numbers<[2], [2], [1], [1], [0, 0, 0, 1, 1, 1], [0], [0]>} : vector<8x8x8xf32>, vector<8x8x8xf32>, vector<8x8x8xf32> -> vector<8x8x8xf32>
    "tpu.trace_stop"() : () -> ()
    %cst_13 = arith.constant 0.353553385 : f32
    %47 = vector.broadcast %cst_13 : f32 to vector<8x8x8xf32>
    %48 = arith.mulf %46, %47 : vector<8x8x8xf32>
    %cst_14 = arith.constant dense<0xFF800000> : vector<8x8xf32>
    %49 = vector.multi_reduction <maximumf>, %48, %cst_14 [2] : vector<8x8x8xf32> to vector<8x8xf32>
    %50 = vector.shape_cast %49 : vector<8x8xf32> to vector<8x8x1xf32>
    %51 = vector.broadcast %50 : vector<8x8x1xf32> to vector<8x8x8xf32>
    %52 = arith.subf %48, %51 : vector<8x8x8xf32>
    %53 = math.exp %52 : vector<8x8x8xf32>
    %cst_15 = arith.constant dense<0.000000e+00> : vector<8x8xf32>
    %54 = vector.multi_reduction <add>, %53, %cst_15 [2] : vector<8x8x8xf32> to vector<8x8xf32>
    %55 = vector.shape_cast %54 : vector<8x8xf32> to vector<8x8x1xf32>
    %56 = tpu.reciprocal %55 {approx = true} : vector<8x8x1xf32> -> vector<8x8x1xf32>
    %57 = vector.broadcast %56 : vector<8x8x1xf32> to vector<8x8x8xf32>
    %58 = arith.mulf %53, %57 : vector<8x8x8xf32>
    "tpu.trace_start"() <{level = 10 : i32, message = "bqk,bkd->bqd"}> : () -> ()
    %cst_16 = arith.constant dense<0.000000e+00> : vector<8x8x8xf32>
    %59 = tpu.matmul %58, %45, %cst_16 {dimension_numbers = #tpu.dot_dimension_numbers<[2], [1], [1], [2], [0, 0, 0, 1, 1, 2], [0], [0]>} : vector<8x8x8xf32>, vector<8x8x8xf32>, vector<8x8x8xf32> -> vector<8x8x8xf32>
    "tpu.trace_stop"() : () -> ()
    %60 = vector.extract_strided_slice %59 {offsets = [0, 0, 0], sizes = [2, 8, 8], strides = [1, 1, 1]} : vector<8x8x8xf32> to vector<2x8x8xf32>
    %61 = vector.extract_strided_slice %59 {offsets = [2, 0, 0], sizes = [2, 8, 8], strides = [1, 1, 1]} : vector<8x8x8xf32> to vector<2x8x8xf32>
    %62 = vector.extract_strided_slice %59 {offsets = [4, 0, 0], sizes = [2, 8, 8], strides = [1, 1, 1]} : vector<8x8x8xf32> to vector<2x8x8xf32>
    %63 = vector.extract_strided_slice %59 {offsets = [6, 0, 0], sizes = [2, 8, 8], strides = [1, 1, 1]} : vector<8x8x8xf32> to vector<2x8x8xf32>
    %64 = tpu.concatenate %60, %61, %62, %63 in 2 : vector<2x8x8xf32>, vector<2x8x8xf32>, vector<2x8x8xf32>, vector<2x8x8xf32> -> vector<2x8x32xf32>
    %65 = vector.shape_cast %64 : vector<2x8x32xf32> to vector<16x32xf32>
    %c0_17 = arith.constant 0 : index
    %c0_18 = arith.constant 0 : index
    %c0_19 = arith.constant 0 : index
    %66 = vector.load %arg4[%c0_17, %c0_18, %c0_19] : memref<2x32x32xf32, #tpu.memory_space<vmem>>, vector<1x32x32xf32>
    %67 = vector.shape_cast %66 : vector<1x32x32xf32> to vector<32x32xf32>
    %cst_20 = arith.constant dense<0.000000e+00> : vector<16x32xf32>
    %68 = tpu.matmul %65, %67, %cst_20 {dimension_numbers = #tpu.dot_dimension_numbers<[1], [0], [0], [1], [0, 0, 1, 1], [], []>} : vector<16x32xf32>, vector<32x32xf32>, vector<16x32xf32> -> vector<16x32xf32>
    %c0_21 = arith.constant 0 : index
    %c0_22 = arith.constant 0 : index
    %c0_23 = arith.constant 0 : index
    %69 = vector.load %arg5[%c0_21, %c0_22, %c0_23] : memref<2x1x32xf32, #tpu.memory_space<vmem>>, vector<1x1x32xf32>
    %70 = vector.shape_cast %69 : vector<1x1x32xf32> to vector<1x32xf32>
    %71 = vector.broadcast %70 : vector<1x32xf32> to vector<16x32xf32>
    %72 = arith.addf %68, %71 : vector<16x32xf32>
    %73 = arith.addf %8, %72 : vector<16x32xf32>
    %c0_24 = arith.constant 0 : index
    %c0_25 = arith.constant 0 : index
    %c0_26 = arith.constant 0 : index
    %74 = vector.load %arg6[%c0_24, %c0_25, %c0_26] : memref<2x1x32xf32, #tpu.memory_space<vmem>>, vector<1x1x32xf32>
    %75 = vector.shape_cast %74 : vector<1x1x32xf32> to vector<1x32xf32>
    %c0_27 = arith.constant 0 : index
    %c0_28 = arith.constant 0 : index
    %c0_29 = arith.constant 0 : index
    %76 = vector.load %arg7[%c0_27, %c0_28, %c0_29] : memref<2x1x32xf32, #tpu.memory_space<vmem>>, vector<1x1x32xf32>
    %77 = vector.shape_cast %76 : vector<1x1x32xf32> to vector<1x32xf32>
    %cst_30 = arith.constant dense<0.000000e+00> : vector<16xf32>
    %78 = vector.multi_reduction <add>, %73, %cst_30 [1] : vector<16x32xf32> to vector<16xf32>
    %79 = vector.shape_cast %78 : vector<16xf32> to vector<16x1xf32>
    %cst_31 = arith.constant 3.200000e+01 : f32
    %80 = vector.broadcast %cst_31 : f32 to vector<16x1xf32>
    %81 = arith.divf %79, %80 : vector<16x1xf32>
    %82 = arith.mulf %73, %73 : vector<16x32xf32>
    %cst_32 = arith.constant dense<0.000000e+00> : vector<16xf32>
    %83 = vector.multi_reduction <add>, %82, %cst_32 [1] : vector<16x32xf32> to vector<16xf32>
    %84 = vector.shape_cast %83 : vector<16xf32> to vector<16x1xf32>
    %cst_33 = arith.constant 3.200000e+01 : f32
    %85 = vector.broadcast %cst_33 : f32 to vector<16x1xf32>
    %86 = arith.divf %84, %85 : vector<16x1xf32>
    %87 = arith.mulf %81, %81 : vector<16x1xf32>
    %88 = arith.subf %86, %87 : vector<16x1xf32>
    %89 = vector.broadcast %81 : vector<16x1xf32> to vector<16x32xf32>
    %90 = arith.subf %73, %89 : vector<16x32xf32>
    %cst_34 = arith.constant 9.99999974E-6 : f32
    %91 = vector.broadcast %cst_34 : f32 to vector<16x1xf32>
    %92 = arith.addf %88, %91 : vector<16x1xf32>
    %93 = math.rsqrt %92 : vector<16x1xf32>
    %94 = vector.broadcast %93 : vector<16x1xf32> to vector<16x32xf32>
    %95 = arith.mulf %90, %94 : vector<16x32xf32>
    %96 = vector.broadcast %75 : vector<1x32xf32> to vector<16x32xf32>
    %97 = arith.mulf %95, %96 : vector<16x32xf32>
    %98 = vector.broadcast %77 : vector<1x32xf32> to vector<16x32xf32>
    %99 = arith.addf %97, %98 : vector<16x32xf32>
    %c0_35 = arith.constant 0 : index
    %c0_36 = arith.constant 0 : index
    %c0_37 = arith.constant 0 : index
    %100 = vector.load %arg10[%c0_35, %c0_36, %c0_37] : memref<2x32x64xf32, #tpu.memory_space<vmem>>, vector<1x32x64xf32>
    %101 = vector.shape_cast %100 : vector<1x32x64xf32> to vector<32x64xf32>
    %cst_38 = arith.constant dense<0.000000e+00> : vector<16x64xf32>
    %102 = tpu.matmul %99, %101, %cst_38 {dimension_numbers = #tpu.dot_dimension_numbers<[1], [0], [0], [1], [0, 0, 1, 1], [], []>} : vector<16x32xf32>, vector<32x64xf32>, vector<16x64xf32> -> vector<16x64xf32>
    %c0_39 = arith.constant 0 : index
    %c0_40 = arith.constant 0 : index
    %c0_41 = arith.constant 0 : index
    %103 = vector.load %arg11[%c0_39, %c0_40, %c0_41] : memref<2x1x64xf32, #tpu.memory_space<vmem>>, vector<1x1x64xf32>
    %104 = vector.shape_cast %103 : vector<1x1x64xf32> to vector<1x64xf32>
    %105 = vector.broadcast %104 : vector<1x64xf32> to vector<16x64xf32>
    %106 = arith.addf %102, %105 : vector<16x64xf32>
    %cst_42 = arith.constant 0.000000e+00 : f32
    %107 = vector.broadcast %cst_42 : f32 to vector<16x64xf32>
    %108 = arith.maximumf %106, %107 : vector<16x64xf32>
    %c0_43 = arith.constant 0 : index
    %c0_44 = arith.constant 0 : index
    %c0_45 = arith.constant 0 : index
    %109 = vector.load %arg12[%c0_43, %c0_44, %c0_45] : memref<2x64x32xf32, #tpu.memory_space<vmem>>, vector<1x64x32xf32>
    %110 = vector.shape_cast %109 : vector<1x64x32xf32> to vector<64x32xf32>
    %cst_46 = arith.constant dense<0.000000e+00> : vector<16x32xf32>
    %111 = tpu.matmul %108, %110, %cst_46 {dimension_numbers = #tpu.dot_dimension_numbers<[1], [0], [0], [1], [0, 0, 1, 1], [], []>} : vector<16x64xf32>, vector<64x32xf32>, vector<16x32xf32> -> vector<16x32xf32>
    %c0_47 = arith.constant 0 : index
    %c0_48 = arith.constant 0 : index
    %c0_49 = arith.constant 0 : index
    %112 = vector.load %arg13[%c0_47, %c0_48, %c0_49] : memref<2x1x32xf32, #tpu.memory_space<vmem>>, vector<1x1x32xf32>
    %113 = vector.shape_cast %112 : vector<1x1x32xf32> to vector<1x32xf32>
    %114 = vector.broadcast %113 : vector<1x32xf32> to vector<16x32xf32>
    %115 = arith.addf %111, %114 : vector<16x32xf32>
    %116 = arith.addf %99, %115 : vector<16x32xf32>
    %c0_50 = arith.constant 0 : index
    %c0_51 = arith.constant 0 : index
    %c0_52 = arith.constant 0 : index
    %117 = vector.load %arg8[%c0_50, %c0_51, %c0_52] : memref<2x1x32xf32, #tpu.memory_space<vmem>>, vector<1x1x32xf32>
    %118 = vector.shape_cast %117 : vector<1x1x32xf32> to vector<1x32xf32>
    %c0_53 = arith.constant 0 : index
    %c0_54 = arith.constant 0 : index
    %c0_55 = arith.constant 0 : index
    %119 = vector.load %arg9[%c0_53, %c0_54, %c0_55] : memref<2x1x32xf32, #tpu.memory_space<vmem>>, vector<1x1x32xf32>
    %120 = vector.shape_cast %119 : vector<1x1x32xf32> to vector<1x32xf32>
    %cst_56 = arith.constant dense<0.000000e+00> : vector<16xf32>
    %121 = vector.multi_reduction <add>, %116, %cst_56 [1] : vector<16x32xf32> to vector<16xf32>
    %122 = vector.shape_cast %121 : vector<16xf32> to vector<16x1xf32>
    %cst_57 = arith.constant 3.200000e+01 : f32
    %123 = vector.broadcast %cst_57 : f32 to vector<16x1xf32>
    %124 = arith.divf %122, %123 : vector<16x1xf32>
    %125 = arith.mulf %116, %116 : vector<16x32xf32>
    %cst_58 = arith.constant dense<0.000000e+00> : vector<16xf32>
    %126 = vector.multi_reduction <add>, %125, %cst_58 [1] : vector<16x32xf32> to vector<16xf32>
    %127 = vector.shape_cast %126 : vector<16xf32> to vector<16x1xf32>
    %cst_59 = arith.constant 3.200000e+01 : f32
    %128 = vector.broadcast %cst_59 : f32 to vector<16x1xf32>
    %129 = arith.divf %127, %128 : vector<16x1xf32>
    %130 = arith.mulf %124, %124 : vector<16x1xf32>
    %131 = arith.subf %129, %130 : vector<16x1xf32>
    %132 = vector.broadcast %124 : vector<16x1xf32> to vector<16x32xf32>
    %133 = arith.subf %116, %132 : vector<16x32xf32>
    %cst_60 = arith.constant 9.99999974E-6 : f32
    %134 = vector.broadcast %cst_60 : f32 to vector<16x1xf32>
    %135 = arith.addf %131, %134 : vector<16x1xf32>
    %136 = math.rsqrt %135 : vector<16x1xf32>
    %137 = vector.broadcast %136 : vector<16x1xf32> to vector<16x32xf32>
    %138 = arith.mulf %133, %137 : vector<16x32xf32>
    %139 = vector.broadcast %118 : vector<1x32xf32> to vector<16x32xf32>
    %140 = arith.mulf %138, %139 : vector<16x32xf32>
    %141 = vector.broadcast %120 : vector<1x32xf32> to vector<16x32xf32>
    %142 = arith.addf %140, %141 : vector<16x32xf32>
    %c1 = arith.constant 1 : index
    %c0_61 = arith.constant 0 : index
    %c0_62 = arith.constant 0 : index
    %143 = vector.load %arg2[%c1, %c0_61, %c0_62] : memref<2x32x96xf32, #tpu.memory_space<vmem>>, vector<1x32x96xf32>
    %144 = vector.shape_cast %143 : vector<1x32x96xf32> to vector<32x96xf32>
    %cst_63 = arith.constant dense<0.000000e+00> : vector<16x96xf32>
    %145 = tpu.matmul %142, %144, %cst_63 {dimension_numbers = #tpu.dot_dimension_numbers<[1], [0], [0], [1], [0, 0, 1, 1], [], []>} : vector<16x32xf32>, vector<32x96xf32>, vector<16x96xf32> -> vector<16x96xf32>
    %c1_64 = arith.constant 1 : index
    %c0_65 = arith.constant 0 : index
    %c0_66 = arith.constant 0 : index
    %146 = vector.load %arg3[%c1_64, %c0_65, %c0_66] : memref<2x1x96xf32, #tpu.memory_space<vmem>>, vector<1x1x96xf32>
    %147 = vector.shape_cast %146 : vector<1x1x96xf32> to vector<1x96xf32>
    %148 = vector.broadcast %147 : vector<1x96xf32> to vector<16x96xf32>
    %149 = arith.addf %145, %148 : vector<16x96xf32>
    %150 = vector.extract_strided_slice %149 {offsets = [0, 0], sizes = [16, 32], strides = [1, 1]} : vector<16x96xf32> to vector<16x32xf32>
    %151 = vector.extract_strided_slice %149 {offsets = [0, 32], sizes = [16, 32], strides = [1, 1]} : vector<16x96xf32> to vector<16x32xf32>
    %152 = vector.extract_strided_slice %149 {offsets = [0, 64], sizes = [16, 32], strides = [1, 1]} : vector<16x96xf32> to vector<16x32xf32>
    %153 = vector.extract_strided_slice %150 {offsets = [0, 0], sizes = [16, 8], strides = [1, 1]} : vector<16x32xf32> to vector<16x8xf32>
    %154 = vector.shape_cast %153 : vector<16x8xf32> to vector<2x8x8xf32>
    %155 = vector.extract_strided_slice %150 {offsets = [0, 8], sizes = [16, 8], strides = [1, 1]} : vector<16x32xf32> to vector<16x8xf32>
    %156 = vector.shape_cast %155 : vector<16x8xf32> to vector<2x8x8xf32>
    %157 = vector.extract_strided_slice %150 {offsets = [0, 16], sizes = [16, 8], strides = [1, 1]} : vector<16x32xf32> to vector<16x8xf32>
    %158 = vector.shape_cast %157 : vector<16x8xf32> to vector<2x8x8xf32>
    %159 = vector.extract_strided_slice %150 {offsets = [0, 24], sizes = [16, 8], strides = [1, 1]} : vector<16x32xf32> to vector<16x8xf32>
    %160 = vector.shape_cast %159 : vector<16x8xf32> to vector<2x8x8xf32>
    %161 = tpu.concatenate %154, %156, %158, %160 in 0 : vector<2x8x8xf32>, vector<2x8x8xf32>, vector<2x8x8xf32>, vector<2x8x8xf32> -> vector<8x8x8xf32>
    %162 = vector.extract_strided_slice %151 {offsets = [0, 0], sizes = [16, 8], strides = [1, 1]} : vector<16x32xf32> to vector<16x8xf32>
    %163 = vector.shape_cast %162 : vector<16x8xf32> to vector<2x8x8xf32>
    %164 = vector.extract_strided_slice %151 {offsets = [0, 8], sizes = [16, 8], strides = [1, 1]} : vector<16x32xf32> to vector<16x8xf32>
    %165 = vector.shape_cast %164 : vector<16x8xf32> to vector<2x8x8xf32>
    %166 = vector.extract_strided_slice %151 {offsets = [0, 16], sizes = [16, 8], strides = [1, 1]} : vector<16x32xf32> to vector<16x8xf32>
    %167 = vector.shape_cast %166 : vector<16x8xf32> to vector<2x8x8xf32>
    %168 = vector.extract_strided_slice %151 {offsets = [0, 24], sizes = [16, 8], strides = [1, 1]} : vector<16x32xf32> to vector<16x8xf32>
    %169 = vector.shape_cast %168 : vector<16x8xf32> to vector<2x8x8xf32>
    %170 = tpu.concatenate %163, %165, %167, %169 in 0 : vector<2x8x8xf32>, vector<2x8x8xf32>, vector<2x8x8xf32>, vector<2x8x8xf32> -> vector<8x8x8xf32>
    %171 = vector.extract_strided_slice %152 {offsets = [0, 0], sizes = [16, 8], strides = [1, 1]} : vector<16x32xf32> to vector<16x8xf32>
    %172 = vector.shape_cast %171 : vector<16x8xf32> to vector<2x8x8xf32>
    %173 = vector.extract_strided_slice %152 {offsets = [0, 8], sizes = [16, 8], strides = [1, 1]} : vector<16x32xf32> to vector<16x8xf32>
    %174 = vector.shape_cast %173 : vector<16x8xf32> to vector<2x8x8xf32>
    %175 = vector.extract_strided_slice %152 {offsets = [0, 16], sizes = [16, 8], strides = [1, 1]} : vector<16x32xf32> to vector<16x8xf32>
    %176 = vector.shape_cast %175 : vector<16x8xf32> to vector<2x8x8xf32>
    %177 = vector.extract_strided_slice %152 {offsets = [0, 24], sizes = [16, 8], strides = [1, 1]} : vector<16x32xf32> to vector<16x8xf32>
    %178 = vector.shape_cast %177 : vector<16x8xf32> to vector<2x8x8xf32>
    %179 = tpu.concatenate %172, %174, %176, %178 in 0 : vector<2x8x8xf32>, vector<2x8x8xf32>, vector<2x8x8xf32>, vector<2x8x8xf32> -> vector<8x8x8xf32>
    "tpu.trace_start"() <{level = 10 : i32, message = "bqd,bkd->bqk"}> : () -> ()
    %cst_67 = arith.constant dense<0.000000e+00> : vector<8x8x8xf32>
    %180 = tpu.matmul %161, %170, %cst_67 {dimension_numbers = #tpu.dot_dimension_numbers<[2], [2], [1], [1], [0, 0, 0, 1, 1, 1], [0], [0]>} : vector<8x8x8xf32>, vector<8x8x8xf32>, vector<8x8x8xf32> -> vector<8x8x8xf32>
    "tpu.trace_stop"() : () -> ()
    %cst_68 = arith.constant 0.353553385 : f32
    %181 = vector.broadcast %cst_68 : f32 to vector<8x8x8xf32>
    %182 = arith.mulf %180, %181 : vector<8x8x8xf32>
    %cst_69 = arith.constant dense<0xFF800000> : vector<8x8xf32>
    %183 = vector.multi_reduction <maximumf>, %182, %cst_69 [2] : vector<8x8x8xf32> to vector<8x8xf32>
    %184 = vector.shape_cast %183 : vector<8x8xf32> to vector<8x8x1xf32>
    %185 = vector.broadcast %184 : vector<8x8x1xf32> to vector<8x8x8xf32>
    %186 = arith.subf %182, %185 : vector<8x8x8xf32>
    %187 = math.exp %186 : vector<8x8x8xf32>
    %cst_70 = arith.constant dense<0.000000e+00> : vector<8x8xf32>
    %188 = vector.multi_reduction <add>, %187, %cst_70 [2] : vector<8x8x8xf32> to vector<8x8xf32>
    %189 = vector.shape_cast %188 : vector<8x8xf32> to vector<8x8x1xf32>
    %190 = tpu.reciprocal %189 {approx = true} : vector<8x8x1xf32> -> vector<8x8x1xf32>
    %191 = vector.broadcast %190 : vector<8x8x1xf32> to vector<8x8x8xf32>
    %192 = arith.mulf %187, %191 : vector<8x8x8xf32>
    "tpu.trace_start"() <{level = 10 : i32, message = "bqk,bkd->bqd"}> : () -> ()
    %cst_71 = arith.constant dense<0.000000e+00> : vector<8x8x8xf32>
    %193 = tpu.matmul %192, %179, %cst_71 {dimension_numbers = #tpu.dot_dimension_numbers<[2], [1], [1], [2], [0, 0, 0, 1, 1, 2], [0], [0]>} : vector<8x8x8xf32>, vector<8x8x8xf32>, vector<8x8x8xf32> -> vector<8x8x8xf32>
    "tpu.trace_stop"() : () -> ()
    %194 = vector.extract_strided_slice %193 {offsets = [0, 0, 0], sizes = [2, 8, 8], strides = [1, 1, 1]} : vector<8x8x8xf32> to vector<2x8x8xf32>
    %195 = vector.extract_strided_slice %193 {offsets = [2, 0, 0], sizes = [2, 8, 8], strides = [1, 1, 1]} : vector<8x8x8xf32> to vector<2x8x8xf32>
    %196 = vector.extract_strided_slice %193 {offsets = [4, 0, 0], sizes = [2, 8, 8], strides = [1, 1, 1]} : vector<8x8x8xf32> to vector<2x8x8xf32>
    %197 = vector.extract_strided_slice %193 {offsets = [6, 0, 0], sizes = [2, 8, 8], strides = [1, 1, 1]} : vector<8x8x8xf32> to vector<2x8x8xf32>
    %198 = tpu.concatenate %194, %195, %196, %197 in 2 : vector<2x8x8xf32>, vector<2x8x8xf32>, vector<2x8x8xf32>, vector<2x8x8xf32> -> vector<2x8x32xf32>
    %199 = vector.shape_cast %198 : vector<2x8x32xf32> to vector<16x32xf32>
    %c1_72 = arith.constant 1 : index
    %c0_73 = arith.constant 0 : index
    %c0_74 = arith.constant 0 : index
    %200 = vector.load %arg4[%c1_72, %c0_73, %c0_74] : memref<2x32x32xf32, #tpu.memory_space<vmem>>, vector<1x32x32xf32>
    %201 = vector.shape_cast %200 : vector<1x32x32xf32> to vector<32x32xf32>
    %cst_75 = arith.constant dense<0.000000e+00> : vector<16x32xf32>
    %202 = tpu.matmul %199, %201, %cst_75 {dimension_numbers = #tpu.dot_dimension_numbers<[1], [0], [0], [1], [0, 0, 1, 1], [], []>} : vector<16x32xf32>, vector<32x32xf32>, vector<16x32xf32> -> vector<16x32xf32>
    %c1_76 = arith.constant 1 : index
    %c0_77 = arith.constant 0 : index
    %c0_78 = arith.constant 0 : index
    %203 = vector.load %arg5[%c1_76, %c0_77, %c0_78] : memref<2x1x32xf32, #tpu.memory_space<vmem>>, vector<1x1x32xf32>
    %204 = vector.shape_cast %203 : vector<1x1x32xf32> to vector<1x32xf32>
    %205 = vector.broadcast %204 : vector<1x32xf32> to vector<16x32xf32>
    %206 = arith.addf %202, %205 : vector<16x32xf32>
    %207 = arith.addf %142, %206 : vector<16x32xf32>
    %c1_79 = arith.constant 1 : index
    %c0_80 = arith.constant 0 : index
    %c0_81 = arith.constant 0 : index
    %208 = vector.load %arg6[%c1_79, %c0_80, %c0_81] : memref<2x1x32xf32, #tpu.memory_space<vmem>>, vector<1x1x32xf32>
    %209 = vector.shape_cast %208 : vector<1x1x32xf32> to vector<1x32xf32>
    %c1_82 = arith.constant 1 : index
    %c0_83 = arith.constant 0 : index
    %c0_84 = arith.constant 0 : index
    %210 = vector.load %arg7[%c1_82, %c0_83, %c0_84] : memref<2x1x32xf32, #tpu.memory_space<vmem>>, vector<1x1x32xf32>
    %211 = vector.shape_cast %210 : vector<1x1x32xf32> to vector<1x32xf32>
    %cst_85 = arith.constant dense<0.000000e+00> : vector<16xf32>
    %212 = vector.multi_reduction <add>, %207, %cst_85 [1] : vector<16x32xf32> to vector<16xf32>
    %213 = vector.shape_cast %212 : vector<16xf32> to vector<16x1xf32>
    %cst_86 = arith.constant 3.200000e+01 : f32
    %214 = vector.broadcast %cst_86 : f32 to vector<16x1xf32>
    %215 = arith.divf %213, %214 : vector<16x1xf32>
    %216 = arith.mulf %207, %207 : vector<16x32xf32>
    %cst_87 = arith.constant dense<0.000000e+00> : vector<16xf32>
    %217 = vector.multi_reduction <add>, %216, %cst_87 [1] : vector<16x32xf32> to vector<16xf32>
    %218 = vector.shape_cast %217 : vector<16xf32> to vector<16x1xf32>
    %cst_88 = arith.constant 3.200000e+01 : f32
    %219 = vector.broadcast %cst_88 : f32 to vector<16x1xf32>
    %220 = arith.divf %218, %219 : vector<16x1xf32>
    %221 = arith.mulf %215, %215 : vector<16x1xf32>
    %222 = arith.subf %220, %221 : vector<16x1xf32>
    %223 = vector.broadcast %215 : vector<16x1xf32> to vector<16x32xf32>
    %224 = arith.subf %207, %223 : vector<16x32xf32>
    %cst_89 = arith.constant 9.99999974E-6 : f32
    %225 = vector.broadcast %cst_89 : f32 to vector<16x1xf32>
    %226 = arith.addf %222, %225 : vector<16x1xf32>
    %227 = math.rsqrt %226 : vector<16x1xf32>
    %228 = vector.broadcast %227 : vector<16x1xf32> to vector<16x32xf32>
    %229 = arith.mulf %224, %228 : vector<16x32xf32>
    %230 = vector.broadcast %209 : vector<1x32xf32> to vector<16x32xf32>
    %231 = arith.mulf %229, %230 : vector<16x32xf32>
    %232 = vector.broadcast %211 : vector<1x32xf32> to vector<16x32xf32>
    %233 = arith.addf %231, %232 : vector<16x32xf32>
    %c1_90 = arith.constant 1 : index
    %c0_91 = arith.constant 0 : index
    %c0_92 = arith.constant 0 : index
    %234 = vector.load %arg10[%c1_90, %c0_91, %c0_92] : memref<2x32x64xf32, #tpu.memory_space<vmem>>, vector<1x32x64xf32>
    %235 = vector.shape_cast %234 : vector<1x32x64xf32> to vector<32x64xf32>
    %cst_93 = arith.constant dense<0.000000e+00> : vector<16x64xf32>
    %236 = tpu.matmul %233, %235, %cst_93 {dimension_numbers = #tpu.dot_dimension_numbers<[1], [0], [0], [1], [0, 0, 1, 1], [], []>} : vector<16x32xf32>, vector<32x64xf32>, vector<16x64xf32> -> vector<16x64xf32>
    %c1_94 = arith.constant 1 : index
    %c0_95 = arith.constant 0 : index
    %c0_96 = arith.constant 0 : index
    %237 = vector.load %arg11[%c1_94, %c0_95, %c0_96] : memref<2x1x64xf32, #tpu.memory_space<vmem>>, vector<1x1x64xf32>
    %238 = vector.shape_cast %237 : vector<1x1x64xf32> to vector<1x64xf32>
    %239 = vector.broadcast %238 : vector<1x64xf32> to vector<16x64xf32>
    %240 = arith.addf %236, %239 : vector<16x64xf32>
    %cst_97 = arith.constant 0.000000e+00 : f32
    %241 = vector.broadcast %cst_97 : f32 to vector<16x64xf32>
    %242 = arith.maximumf %240, %241 : vector<16x64xf32>
    %c1_98 = arith.constant 1 : index
    %c0_99 = arith.constant 0 : index
    %c0_100 = arith.constant 0 : index
    %243 = vector.load %arg12[%c1_98, %c0_99, %c0_100] : memref<2x64x32xf32, #tpu.memory_space<vmem>>, vector<1x64x32xf32>
    %244 = vector.shape_cast %243 : vector<1x64x32xf32> to vector<64x32xf32>
    %cst_101 = arith.constant dense<0.000000e+00> : vector<16x32xf32>
    %245 = tpu.matmul %242, %244, %cst_101 {dimension_numbers = #tpu.dot_dimension_numbers<[1], [0], [0], [1], [0, 0, 1, 1], [], []>} : vector<16x64xf32>, vector<64x32xf32>, vector<16x32xf32> -> vector<16x32xf32>
    %c1_102 = arith.constant 1 : index
    %c0_103 = arith.constant 0 : index
    %c0_104 = arith.constant 0 : index
    %246 = vector.load %arg13[%c1_102, %c0_103, %c0_104] : memref<2x1x32xf32, #tpu.memory_space<vmem>>, vector<1x1x32xf32>
    %247 = vector.shape_cast %246 : vector<1x1x32xf32> to vector<1x32xf32>
    %248 = vector.broadcast %247 : vector<1x32xf32> to vector<16x32xf32>
    %249 = arith.addf %245, %248 : vector<16x32xf32>
    %250 = arith.addf %233, %249 : vector<16x32xf32>
    %c1_105 = arith.constant 1 : index
    %c0_106 = arith.constant 0 : index
    %c0_107 = arith.constant 0 : index
    %251 = vector.load %arg8[%c1_105, %c0_106, %c0_107] : memref<2x1x32xf32, #tpu.memory_space<vmem>>, vector<1x1x32xf32>
    %252 = vector.shape_cast %251 : vector<1x1x32xf32> to vector<1x32xf32>
    %c1_108 = arith.constant 1 : index
    %c0_109 = arith.constant 0 : index
    %c0_110 = arith.constant 0 : index
    %253 = vector.load %arg9[%c1_108, %c0_109, %c0_110] : memref<2x1x32xf32, #tpu.memory_space<vmem>>, vector<1x1x32xf32>
    %254 = vector.shape_cast %253 : vector<1x1x32xf32> to vector<1x32xf32>
    %cst_111 = arith.constant dense<0.000000e+00> : vector<16xf32>
    %255 = vector.multi_reduction <add>, %250, %cst_111 [1] : vector<16x32xf32> to vector<16xf32>
    %256 = vector.shape_cast %255 : vector<16xf32> to vector<16x1xf32>
    %cst_112 = arith.constant 3.200000e+01 : f32
    %257 = vector.broadcast %cst_112 : f32 to vector<16x1xf32>
    %258 = arith.divf %256, %257 : vector<16x1xf32>
    %259 = arith.mulf %250, %250 : vector<16x32xf32>
    %cst_113 = arith.constant dense<0.000000e+00> : vector<16xf32>
    %260 = vector.multi_reduction <add>, %259, %cst_113 [1] : vector<16x32xf32> to vector<16xf32>
    %261 = vector.shape_cast %260 : vector<16xf32> to vector<16x1xf32>
    %cst_114 = arith.constant 3.200000e+01 : f32
    %262 = vector.broadcast %cst_114 : f32 to vector<16x1xf32>
    %263 = arith.divf %261, %262 : vector<16x1xf32>
    %264 = arith.mulf %258, %258 : vector<16x1xf32>
    %265 = arith.subf %263, %264 : vector<16x1xf32>
    %266 = vector.broadcast %258 : vector<16x1xf32> to vector<16x32xf32>
    %267 = arith.subf %250, %266 : vector<16x32xf32>
    %cst_115 = arith.constant 9.99999974E-6 : f32
    %268 = vector.broadcast %cst_115 : f32 to vector<16x1xf32>
    %269 = arith.addf %265, %268 : vector<16x1xf32>
    %270 = math.rsqrt %269 : vector<16x1xf32>
    %271 = vector.broadcast %270 : vector<16x1xf32> to vector<16x32xf32>
    %272 = arith.mulf %267, %271 : vector<16x32xf32>
    %273 = vector.broadcast %252 : vector<1x32xf32> to vector<16x32xf32>
    %274 = arith.mulf %272, %273 : vector<16x32xf32>
    %275 = vector.broadcast %254 : vector<1x32xf32> to vector<16x32xf32>
    %276 = arith.addf %274, %275 : vector<16x32xf32>
    %277 = vector.shape_cast %276 : vector<16x32xf32> to vector<2x8x32xf32>
    %cst_116 = arith.constant dense<0.000000e+00> : vector<2x32xf32>
    %278 = vector.multi_reduction <add>, %277, %cst_116 [1] : vector<2x8x32xf32> to vector<2x32xf32>
    %cst_117 = arith.constant 8.000000e+00 : f32
    %279 = vector.broadcast %cst_117 : f32 to vector<2x32xf32>
    %280 = arith.divf %278, %279 : vector<2x32xf32>
    %c0_118 = arith.constant 0 : index
    %c0_119 = arith.constant 0 : index
    %281 = vector.load %arg14[%c0_118, %c0_119] : memref<32x4xf32, #tpu.memory_space<vmem>>, vector<32x4xf32>
    %cst_120 = arith.constant dense<0.000000e+00> : vector<2x4xf32>
    %282 = tpu.matmul %280, %281, %cst_120 {dimension_numbers = #tpu.dot_dimension_numbers<[1], [0], [0], [1], [0, 0, 1, 1], [], []>} : vector<2x32xf32>, vector<32x4xf32>, vector<2x4xf32> -> vector<2x4xf32>
    %c0_121 = arith.constant 0 : index
    %c0_122 = arith.constant 0 : index
    %283 = vector.load %arg15[%c0_121, %c0_122] : memref<1x4xf32, #tpu.memory_space<vmem>>, vector<1x4xf32>
    %284 = vector.broadcast %283 : vector<1x4xf32> to vector<2x4xf32>
    %285 = arith.addf %282, %284 : vector<2x4xf32>
    %cst_123 = arith.constant dense<0xFF800000> : vector<2xf32>
    %286 = vector.multi_reduction <maximumf>, %285, %cst_123 [1] : vector<2x4xf32> to vector<2xf32>
    %287 = vector.shape_cast %286 : vector<2xf32> to vector<2x1xf32>
    %288 = vector.broadcast %287 : vector<2x1xf32> to vector<2x4xf32>
    %289 = arith.subf %285, %288 : vector<2x4xf32>
    %290 = math.exp %289 : vector<2x4xf32>
    %cst_124 = arith.constant dense<0.000000e+00> : vector<2xf32>
    %291 = vector.multi_reduction <add>, %290, %cst_124 [1] : vector<2x4xf32> to vector<2xf32>
    %292 = vector.shape_cast %291 : vector<2xf32> to vector<2x1xf32>
    %293 = vector.broadcast %292 : vector<2x1xf32> to vector<2x4xf32>
    %294 = arith.divf %290, %293 : vector<2x4xf32>
    %c0_125 = arith.constant 0 : index
    %c0_126 = arith.constant 0 : index
    %295 = vector.load %arg16[%c0_125, %c0_126] : memref<2x4xf32, #tpu.memory_space<vmem>>, vector<2x4xf32>
    tpu.vector_store %arg16[%c0_125, %c0_126], %294 {strides = array<i32>} : memref<2x4xf32, #tpu.memory_space<vmem>>, vector<2x4xf32>,
    return
  }
}

</mosaic_0001>

<bundles_post_ra>
// kernel: transformer_forward.1
= control target key start
LH: loop header
LB: loop body
LE: loop exit
PB: predicated region body
PF: predicated region fallthrough
CT: control target
= control target key end

     0   :  { %s5550_s0 = inlined_call_operand.vmem [shape: s32[16,1], index: 0, kind: input, shape index: {}]   ;;  %s5551_s1 = inlined_call_operand.vmem [shape: f32[128,32], index: 1, kind: input, shape index: {}]   ;;  %s5552_s2 = inlined_call_operand.vmem [shape: f32[2,32,96], index: 2, kind: input, shape index: {}]   ;;  %s5553_s3 = inlined_call_operand.vmem [shape: f32[2,1,96], index: 3, kind: input, shape index: {}]   ;;  %s5554_s4 = inlined_call_operand.vmem [shape: f32[2,32,32], index: 4, kind: input, shape index: {}]   ;;  %s5555_s5 = inlined_call_operand.vmem [shape: f32[2,1,32], index: 5, kind: input, shape index: {}]   ;;  %s5556_s6 = inlined_call_operand.vmem [shape: f32[2,1,32], index: 6, kind: input, shape index: {}]   ;;  %s5557_s7 = inlined_call_operand.vmem [shape: f32[2,1,32], index: 7, kind: input, shape index: {}]   ;;  %s5558_s8 = inlined_call_operand.vmem [shape: f32[2,1,32], index: 8, kind: input, shape index: {}]   ;;  %s5559_s9 = inlined_call_operand.vmem [shape: f32[2,1,32], index: 9, kind: input, shape index: {}]   ;;  %s5560_s10 = inlined_call_operand.vmem [shape: f32[2,32,64], index: 10, kind: input, shape index: {}]   ;;  %s5561_s11 = inlined_call_operand.vmem [shape: f32[2,1,64], index: 11, kind: input, shape index: {}]   ;;  %s5562_s12 = inlined_call_operand.vmem [shape: f32[2,64,32], index: 12, kind: input, shape index: {}]   ;;  %s5563_s13 = inlined_call_operand.vmem [shape: f32[2,1,32], index: 13, kind: input, shape index: {}]   ;;  %s5564_s14 = inlined_call_operand.vmem [shape: f32[32,4], index: 14, kind: input, shape index: {}]   ;;  %s5565_s15 = inlined_call_operand.vmem [shape: f32[1,4], index: 15, kind: input, shape index: {}]   ;;  %s5566_s16 = inlined_call_operand.hbm [shape: f32[2,4], index: 16, kind: output, shape index: {}]  }
   0x1   :  { %5572 = sst [smem:[#allocation5_spill]] %s5550_s0 }
   0x2   :  { %s5573_s23 = sld [smem:[#allocation5_spill]]  ;;  %v68_v1 = vld [vmem:[%s5551_s1] sm:$0xff]  ;;  %v4774_v2 = vmov 0   ;;  %v69_v3 = vld [vmem:[%s5551_s1 + $0x8] sm:$0xff]  ;;  %v70_v4 = vld [vmem:[%s5551_s1 + $0x10] sm:$0xff] }
   0x3   :  { %4665 = vset.pattern.permute.xlu0 %v4774_v2  ;;  %v71_v5 = vld [vmem:[%s5551_s1 + $0x18] sm:$0xff]  ;;  %v4533_v6 = vpack.c.bf16 %v69_v3, %v68_v1  ;;  %v72_v9 = vld [vmem:[%s5551_s1 + $0x20] sm:$0xff]  ;;  %v73_v10 = vld [vmem:[%s5551_s1 + $0x28] sm:$0xff] }
   0x4   :  { %v4537_v7 = vpack.c.bf16 %v71_v5, %v70_v4  ;;  %v4541_v11 = vpack.c.bf16 %v73_v10, %v72_v9  ;;  %v74_v12 = vld [vmem:[%s5551_s1 + $0x30] sm:$0xff]  ;;  %v75_v13 = vld [vmem:[%s5551_s1 + $0x38] sm:$0xff] }
   0x5   :  { %4534 = vmatprep.subr.bf16.mxu0 %v4533_v6 }
   0x6   :  { %4536 = vmatpush3.bf16.msra.mxu0 %v4533_v6 }
   0x7   :  { %4538 = vmatprep.subr.bf16.mxu0 %v4537_v7 }
   0x8   :  { %v54_v0 = vld [vmem:[%s5573_s23] sm:$0xff]  ;;  %v55_v8 = vld [vmem:[%s5573_s23 + $0x8] sm:$0xff] }
   0x9   :  { %59 = vperm.xlu0 %4665, %v54_v0  }
   0xd   :  { %62 = vperm.xlu0 %4665, %v55_v8  }
   0xe   :  { %21 = vsyncpa [#allocation3], 0  ;;  %v159_v14 = vld [vmem:[%s5552_s2] sm:$0xff]  ;;  %v160_v15 = vld [vmem:[%s5552_s2 + $0x8] sm:$0xff]  ;;  %4540 = vmatpush3.bf16.msra.mxu0 %v4537_v7  ;;  %v4545_v20 = vpack.c.bf16 %v75_v13, %v74_v12  ;;  %v56_v33 = vlaneseq  ;;  %v4775_v36 = vmov 1.0   ;;  %vm170_vm2 = vcmask 261120  }
   0xf   :  { %v161_v16 = vld [vmem:[%s5552_s2 + $0x10] sm:$0xff]  ;;  %v4565_v17 = vpack.c.bf16 %v160_v15, %v159_v14  ;;  %v162_v18 = vld [vmem:[%s5552_s2 + $0x18] sm:$0xff]  ;;  %4542 = vmatprep.subr.bf16.mxu0 %v4541_v11  ;;  %v76_v21 = vld [vmem:[%s5551_s1 + $0x40] sm:$0xff]  ;;  %v4776_v40 = vmov 0.0   ;;  %vm4777_vm3 = vmmov 0   ;;  %s4778_s22 = smov 112  }
  0x10   :  { %v4569_v19 = vpack.c.bf16 %v162_v18, %v161_v16  ;;  %v77_v22 = vld [vmem:[%s5551_s1 + $0x48] sm:$0xff]  ;;  %v78_v24 = vld [vmem:[%s5551_s1 + $0x50] sm:$0xff]  ;;  %v79_v25 = vld [vmem:[%s5551_s1 + $0x58] sm:$0xff]  ;;  %v57_v34 = vand.u32 127, %v56_v33  ;;  %s4779_s24 = smov 120   ;;  %s4780_s25 = smov 104  }
  0x11   :  { %4566 = vmatprep.subr.bf16.mxu1 %v4565_v17  ;;  %v4549_v23 = vpack.c.bf16 %v77_v22, %v76_v21  ;;  %v4553_v26 = vpack.c.bf16 %v79_v25, %v78_v24  ;;  %v80_v27 = vld [vmem:[%s5551_s1 + $0x60] sm:$0xff]  ;;  %v81_v28 = vld [vmem:[%s5551_s1 + $0x68] sm:$0xff]  ;;  %v82_v30 = vld [vmem:[%s5551_s1 + $0x70] sm:$0xff]  ;;  %s4781_s26 = smov 96   ;;  %vm268_vm4 = vcmask 64512   ;;  %s4782_s27 = smov 64  }
  0x12   :  { %4568 = vmatpush3.bf16.msra.mxu1 %v4565_v17  ;;  %4544 = vmatpush3.bf16.msra.mxu0 %v4541_v11  ;;  %v4557_v29 = vpack.c.bf16 %v81_v28, %v80_v27  ;;  %v83_v31 = vld [vmem:[%s5551_s1 + $0x78] sm:$0xff]  ;;  %v3970_v41 = vld [vmem:[%s5553_s3] ss:$0 sm:$0xff]  ;;  %s4783_s0 = smov 8   ;;  %s5570_s1 = smov 16   ;;  %vm1605_vm5 = vcmask 130048  }
  0x13   :  { %4570 = vmatprep.subr.bf16.mxu1 %v4569_v19  ;;  %4546 = vmatprep.subr.bf16.mxu0 %v4545_v20  ;;  %v4561_v32 = vpack.c.bf16 %v83_v31, %v82_v30  ;;  %s5568_s21 = smov 24   ;;  %vm1608_vm6 = vcmask 195584   ;;  %vm1863_vm7 = vcmask 523264   ;;  %s5574_s28 = smov 16   ;;  %vm3867_vm8 = vcmask 1041409  }
  0x14   :  { %vm3941_vm9 = vcmask 25600  }
  0x16   :  { %4572 = vmatpush3.bf16.msra.mxu1 %v4569_v19  ;;  %4548 = vmatpush3.bf16.msra.mxu0 %v4545_v20 }
  0x17   :  { %4550 = vmatprep.subr.bf16.mxu0 %v4549_v23  ;;  %4269 = vmatprep.subr.mxu1 %v4776_v40 }
  0x1a   :  { %4552 = vmatpush3.bf16.msra.mxu0 %v4549_v23 }
  0x1b   :  { %4554 = vmatprep.subr.bf16.mxu0 %v4553_v26 }
  0x1e   :  { %4556 = vmatpush3.bf16.msra.mxu0 %v4553_v26 }
  0x1f   :  { %4558 = vmatprep.subr.bf16.mxu0 %v4557_v29 }
  0x22   :  { %4560 = vmatpush3.bf16.msra.mxu0 %v4557_v29 }
  0x23   :  { %4562 = vmatprep.subr.bf16.mxu0 %v4561_v32 }
  0x26   :  { %4564 = vmatpush3.bf16.msra.mxu0 %v4561_v32 }
  0x27   :  { %4309 = vmatprep.subr.mxu0 %v4776_v40 }
  0x88   :  { %v60_v35 = vpop.permute.xlu0 %59 }
  0x89   :  { %vm64_vm0 = vcmp.eq.s32.totalorder %v57_v34, %v60_v35 }
  0x8a   :  { %4255 = vmatprep.mubr.msk.f32.mxu0 %vm64_vm0, %v4775_v36 }
  0x8c   :  { %v63_v37 = vpop.permute.xlu0 %62 }
  0x8d   :  { %vm65_vm1 = vcmp.eq.s32.totalorder %v57_v34, %v63_v37 }
  0x8e   :  { %4256 = vmatmul.mubr.msk.f32.vlgmr.msra.gmra.mrb[0].mxu0 %vm65_vm1, %v4775_v36 }
  0x8f   :  { %4311 = vmatprep.mubr.msk.f32.mxu0 %vm4777_vm3, %v4776_v40 }
 0x161   :  { %v4939_v38 = vpop.f32.mrb[0].mxu0 }
 0x162   :  { %v4941_v39 = vpop.f32.mrb[1].mxu0 }
 0x163   :  { %4266 = vmatprep.mubr.msk.f32.mxu1 %vm170_vm2, %v4941_v39 }
 0x164   :  { %4267 = vmatmul.mubr.msk.f32.vlgmr.msra.gmra.mrb[0].mxu1 %vm170_vm2, %v4939_v38 }
 0x165   :  { %4271 = vmatprep.mubr.msk.f32.mxu1 %vm4777_vm3, %v4776_v40 }
 0x237   :  { %v4268_v42 = vpop.f32.mrb[0].mxu1 }
 0x238   :  { %v243_v43 = vpop.f32.mrb[1].mxu1  ;;  %v4962_v45 = vadd.f32 %v4268_v42, %v3970_v41 }
 0x239   :  { %v4956_v44 = vadd.f32 %v3970_v41, %v243_v43 }
 0x23b   :  { %258 = vrot.lane.b32.xlu0 %v4956_v44, %s4778_s22  ;;  %254 = vrot.lane.b32.xlu1 %v4956_v44, %s4779_s24 }
 0x23f   :  { %262 = vrot.lane.b32.xlu0 %v4956_v44, %s4780_s25  ;;  %256 = vrot.lane.b32.xlu1 %v4962_v45, %s4779_s24 }
 0x243   :  { %266 = vrot.lane.b32.xlu0 %v4956_v44, %s4781_s26  ;;  %260 = vrot.lane.b32.xlu1 %v4962_v45, %s4778_s22 }
 0x247   :  { %264 = vrot.lane.b32.xlu1 %v4962_v45, %s4780_s25 }
 0x24b   :  { %343 = vrot.lane.b32.xlu1 %v4962_v45, %s4781_s26 }
 0x2ad   :  { %v4976_v46 = vpop.permute.xlu0 %258  ;;  %v4978_v47 = vpop.permute.xlu1 %254 }
 0x2ae   :  { %419 = vrot.lane.b32.xlu0 %v4978_v47, %s4781_s26 }
 0x2b1   :  { %v4982_v48 = vpop.permute.xlu0 %262  ;;  %v4984_v49 = vpop.permute.xlu1 %256 }
 0x2b2   :  { %571 = vrot.lane.b32.xlu0 %v4976_v46, %s4781_s26  ;;  %495 = vrot.lane.b32.xlu1 %v4984_v49, %s4781_s26 }
 0x2b5   :  { %v267_v50 = vpop.permute.xlu0 %266  ;;  %v4990_v51 = vpop.permute.xlu1 %260 }
 0x2b6   :  { %4270 = vmatpush3.xpose.msk.msra.mxu1 %vm268_vm4, %v267_v50  ;;  %723 = vrot.lane.b32.xlu0 %v4982_v48, %s4781_s26 }
 0x2b7   :  { %647 = vrot.lane.b32.xlu1 %v4990_v51, %s4781_s26  ;;  %4274 = vmatprep.subr.mxu1 %v4776_v40 }
 0x2b9   :  { %4272 = vmatmul.mubr.msk.f32.vlgmr.msra.gmra.mrb[2].mxu1 %vm268_vm4, %v4956_v44  ;;  %v5000_v52 = vpop.permute.xlu1 %264 }
 0x2ba   :  { %4276 = vmatprep.mubr.msk.f32.mxu1 %vm4777_vm3, %v4776_v40 }
 0x2bb   :  { %799 = vrot.lane.b32.xlu1 %v5000_v52, %s4781_s26 }
 0x2bd   :  { %v344_v53 = vpop.permute.xlu1 %343 }
 0x2be   :  { %4275 = vmatpush3.xpose.msk.msra.mxu1 %vm268_vm4, %v344_v53 }
 0x2bf   :  { %4279 = vmatprep.subr.mxu1 %v4776_v40 }
 0x2c1   :  { %4277 = vmatmul.mubr.msk.f32.vlgmr.msra.gmra.mrb[4].mxu1 %vm268_vm4, %v4962_v45 }
 0x2c2   :  { %4281 = vmatprep.mubr.msk.f32.mxu1 %vm4777_vm3, %v4776_v40 }
 0x320   :  { %v420_v54 = vpop.permute.xlu0 %419 }
 0x321   :  { %4280 = vmatpush3.xpose.msk.msra.mxu1 %vm268_vm4, %v420_v54 }
 0x322   :  { %4284 = vmatprep.subr.mxu1 %v4776_v40 }
 0x324   :  { %4282 = vmatmul.mubr.msk.f32.vlgmr.msra.gmra.mrb[6].mxu1 %vm268_vm4, %v4978_v47  ;;  %v496_v55 = vpop.permute.xlu1 %495  ;;  %v572_v56 = vpop.permute.xlu0 %571 }
 0x325   :  { %4285 = vmatpush3.xpose.msk.msra.mxu1 %vm268_vm4, %v496_v55  ;;  %4286 = vmatprep.mubr.msk.f32.mxu1 %vm4777_vm3, %v4776_v40 }
 0x326   :  { %4289 = vmatprep.subr.mxu1 %v4776_v40 }
 0x328   :  { %4287 = vmatmul.mubr.msk.f32.vlgmr.msra.gmra.mrb[8].mxu1 %vm268_vm4, %v4984_v49  ;;  %v724_v58 = vpop.permute.xlu0 %723 }
 0x329   :  { %4290 = vmatpush3.xpose.msk.msra.mxu1 %vm268_vm4, %v572_v56  ;;  %4291 = vmatprep.mubr.msk.f32.mxu1 %vm4777_vm3, %v4776_v40  ;;  %v648_v57 = vpop.permute.xlu1 %647 }
 0x32a   :  { %4294 = vmatprep.subr.mxu1 %v4776_v40 }
 0x32c   :  { %4292 = vmatmul.mubr.msk.f32.vlgmr.msra.gmra.mrb[10].mxu1 %vm268_vm4, %v4976_v46 }
 0x32d   :  { %4295 = vmatpush3.xpose.msk.msra.mxu1 %vm268_vm4, %v648_v57  ;;  %4296 = vmatprep.mubr.msk.f32.mxu1 %vm4777_vm3, %v4776_v40  ;;  %v800_v59 = vpop.permute.xlu1 %799 }
 0x32e   :  { %4299 = vmatprep.subr.mxu1 %v4776_v40 }
 0x330   :  { %4297 = vmatmul.mubr.msk.f32.vlgmr.msra.gmra.mrb[12].mxu1 %vm268_vm4, %v4990_v51 }
 0x331   :  { %4300 = vmatpush3.xpose.msk.msra.mxu1 %vm268_vm4, %v724_v58  ;;  %4301 = vmatprep.mubr.msk.f32.mxu1 %vm4777_vm3, %v4776_v40 }
 0x332   :  { %4304 = vmatprep.subr.mxu1 %v4776_v40 }
 0x334   :  { %4302 = vmatmul.mubr.msk.f32.vlgmr.msra.gmra.mrb[14].mxu1 %vm268_vm4, %v4982_v48 }
 0x335   :  { %4305 = vmatpush3.xpose.msk.msra.mxu1 %vm268_vm4, %v800_v59  ;;  %4306 = vmatprep.mubr.msk.f32.mxu1 %vm4777_vm3, %v4776_v40 }
 0x336   :  { %4314 = vmatprep.subr.mxu1 %v4776_v40 }
 0x338   :  { %4307 = vmatmul.mubr.msk.f32.vlgmr.msra.gmra.mrb[16].mxu1 %vm268_vm4, %v5000_v52 }
 0x339   :  { %4316 = vmatprep.mubr.msk.f32.mxu1 %vm4777_vm3, %v4776_v40 }
 0x38c   :  { %v339_v60 = vpop.f32.mrb[2].mxu1 }
 0x38d   :  { %v875_v61 = vmul.f32 0.35355338, %v339_v60  ;;  %v4273_v62 = vpop.f32.mrb[3].mxu1 }
 0x38f   :  { %v883_v63 = vsel %vm268_vm4, %v875_v61, -inf }
 0x390   :  { %884 = vmax.xlane.f32.xlu0 %v883_v63 }
 0x394   :  { %v415_v0 = vpop.f32.mrb[4].mxu1 }
 0x395   :  { %v876_v1 = vmul.f32 0.35355338, %v415_v0  ;;  %v4278_v2 = vpop.f32.mrb[5].mxu1 }
 0x397   :  { %v886_v3 = vsel %vm268_vm4, %v876_v1, -inf }
 0x398   :  { %887 = vmax.xlane.f32.xlu1 %v886_v3 }
 0x3f7   :  { %v491_v4 = vpop.f32.mrb[6].mxu1 }
 0x3f8   :  { %v877_v5 = vmul.f32 0.35355338, %v491_v4  ;;  %v4283_v6 = vpop.f32.mrb[7].mxu1 }
 0x3fa   :  { %v889_v7 = vsel %vm268_vm4, %v877_v5, -inf }
 0x3fb   :  { %890 = vmax.xlane.f32.xlu0 %v889_v7  ;;  %v567_v8 = vpop.f32.mrb[8].mxu1 }
 0x3fc   :  { %v878_v9 = vmul.f32 0.35355338, %v567_v8  ;;  %v4288_v10 = vpop.f32.mrb[9].mxu1 }
 0x3fe   :  { %v892_v11 = vsel %vm268_vm4, %v878_v9, -inf }
 0x3ff   :  { %893 = vmax.xlane.f32.xlu0 %v892_v11  ;;  %v643_v12 = vpop.f32.mrb[10].mxu1 }
 0x400   :  { %v879_v13 = vmul.f32 0.35355338, %v643_v12  ;;  %v4293_v14 = vpop.f32.mrb[11].mxu1 }
 0x402   :  { %v895_v15 = vsel %vm268_vm4, %v879_v13, -inf }
 0x403   :  { %896 = vmax.xlane.f32.xlu1 %v895_v15  ;;  %v719_v16 = vpop.f32.mrb[12].mxu1 }
 0x404   :  { %v880_v17 = vmul.f32 0.35355338, %v719_v16  ;;  %v4298_v18 = vpop.f32.mrb[13].mxu1 }
 0x406   :  { %v898_v19 = vsel %vm268_vm4, %v880_v17, -inf }
 0x407   :  { %899 = vmax.xlane.f32.xlu0 %v898_v19  ;;  %v795_v20 = vpop.f32.mrb[14].mxu1 }
 0x408   :  { %v881_v21 = vmul.f32 0.35355338, %v795_v20  ;;  %v4303_v22 = vpop.f32.mrb[15].mxu1 }
 0x40a   :  { %v901_v23 = vsel %vm268_vm4, %v881_v21, -inf }
 0x40b   :  { %902 = vmax.xlane.f32.xlu1 %v901_v23  ;;  %v871_v24 = vpop.f32.mrb[16].mxu1 }
 0x40c   :  { %v882_v25 = vmul.f32 0.35355338, %v871_v24  ;;  %v4308_v26 = vpop.f32.mrb[17].mxu1 }
 0x40e   :  { %v904_v27 = vsel %vm268_vm4, %v882_v25, -inf }
 0x40f   :  { %905 = vmax.xlane.f32.xlu0 %v904_v27 }
 0x41c   :  { %971 = vrot.lane.b32.xlu1 %v4956_v44, %s4782_s27 }
 0x41d   :  { %v885_v30 = vpop.xlane.xlu0 %884 }
 0x41e   :  { %v907_v31 = vsub.f32 %v875_v61, %v885_v30 }
 0x420   :  { %1123 = vrot.lane.b32.xlu1 %v4978_v47, %s4782_s27  ;;  %v915_v33 = vmul.f32 1.442695, %v907_v31 }
 0x424   :  { %1199 = vrot.lane.b32.xlu1 %v4984_v49, %s4782_s27 }
 0x425   :  { %1047 = vrot.lane.b32.xlu0 %v4962_v45, %s4782_s27  ;;  %v888_v28 = vpop.xlane.xlu1 %887 }
 0x426   :  { %v908_v29 = vsub.f32 %v876_v1, %v888_v28 }
 0x428   :  { %1351 = vrot.lane.b32.xlu1 %v4990_v51, %s4782_s27  ;;  %v917_v32 = vmul.f32 1.442695, %v908_v29 }
 0x429   :  { %1275 = vrot.lane.b32.xlu0 %v4976_v46, %s4782_s27 }
 0x42a   :  { %4666 = vpow2.f32 %v917_v32 }
 0x42b   :  { %4668 = vpow2.f32 %v915_v33 }
 0x434   :  { %v5068_v34 = vpop.eup %4666 }
 0x435   :  { %v934_v35 = vsel %vm268_vm4, %v5068_v34, 0.0  ;;  %v5072_v36 = vpop.eup %4668 }
 0x436   :  { %v931_v37 = vsel %vm268_vm4, %v5072_v36, 0.0 }
 0x448   :  { %935 = vadd.xlane.f32.xlu0 %v934_v35 }
 0x44c   :  { %932 = vadd.xlane.f32.xlu1 %v931_v37 }
 0x488   :  { %v891_v41 = vpop.xlane.xlu0 %890 }
 0x489   :  { %v909_v42 = vsub.f32 %v877_v5, %v891_v41 }
 0x48b   :  { %v919_v43 = vmul.f32 1.442695, %v909_v42 }
 0x48c   :  { %v894_v44 = vpop.xlane.xlu0 %893 }
 0x48d   :  { %4670 = vpow2.f32 %v919_v43  ;;  %v910_v45 = vsub.f32 %v878_v9, %v894_v44 }
 0x48f   :  { %v921_v46 = vmul.f32 1.442695, %v910_v45 }
 0x490   :  { %v897_v47 = vpop.xlane.xlu1 %896 }
 0x491   :  { %4672 = vpow2.f32 %v921_v46  ;;  %v911_v49 = vsub.f32 %v879_v13, %v897_v47  ;;  %v1611_v46 = vld [vmem:[%s5554_s4] sm:$0xff]  ;;  %v1612_v47 = vld [vmem:[%s5554_s4 + $0x8] sm:$0xff] }
 0x493   :  { %v923_v50 = vmul.f32 1.442695, %v911_v49 }
 0x494   :  { %v900_v51 = vpop.xlane.xlu0 %899 }
 0x495   :  { %4674 = vpow2.f32 %v923_v50  ;;  %v912_v53 = vsub.f32 %v880_v17, %v900_v51  ;;  %v4573_v50 = vpack.c.bf16 %v1612_v47, %v1611_v46 }
 0x497   :  { %v5076_v54 = vpop.eup %4670  ;;  %v925_v55 = vmul.f32 1.442695, %v912_v53  ;;  %v1613_v53 = vld [vmem:[%s5554_s4 + $0x10] sm:$0xff] }
 0x498   :  { %v903_v56 = vpop.xlane.xlu1 %902  ;;  %v937_v57 = vsel %vm268_vm4, %v5076_v54, 0.0 }
 0x499   :  { %4676 = vpow2.f32 %v925_v55  ;;  %v913_v58 = vsub.f32 %v881_v21, %v903_v56  ;;  %938 = vadd.xlane.f32.xlu1 %v937_v57 }
 0x49b   :  { %v5080_v59 = vpop.eup %4672  ;;  %v927_v60 = vmul.f32 1.442695, %v913_v58 }
 0x49c   :  { %v906_v61 = vpop.xlane.xlu0 %905  ;;  %v972_v62 = vpop.permute.xlu1 %971  ;;  %v940_v63 = vsel %vm268_vm4, %v5080_v59, 0.0 }
 0x49d   :  { %4678 = vpow2.f32 %v927_v60  ;;  %v914_v0 = vsub.f32 %v882_v25, %v906_v61  ;;  %941 = vadd.xlane.f32.xlu0 %v940_v63  ;;  %4310 = vmatpush3.msra.mxu0 %v972_v62 }
 0x49e   :  { %4319 = vmatprep.subr.mxu0 %v4776_v40 }
 0x49f   :  { %v4675_v1 = vpop.eup %4674  ;;  %v929_v2 = vmul.f32 1.442695, %v914_v0 }
 0x4a0   :  { %v1048_v3 = vpop.permute.xlu0 %1047  ;;  %v943_v4 = vsel %vm268_vm4, %v4675_v1, 0.0  ;;  %v1124_v11 = vpop.permute.xlu1 %1123 }
 0x4a1   :  { %4680 = vpow2.f32 %v929_v2  ;;  %4315 = vmatpush3.msra.mxu1 %v1048_v3  ;;  %944 = vadd.xlane.f32.xlu1 %v943_v4 }
 0x4a2   :  { %4324 = vmatprep.subr.mxu1 %v4776_v40 }
 0x4a3   :  { %v4677_v5 = vpop.eup %4676 }
 0x4a4   :  { %v946_v6 = vsel %vm268_vm4, %v4677_v5, 0.0  ;;  %v1200_v12 = vpop.permute.xlu1 %1199  ;;  %v1276_v13 = vpop.permute.xlu0 %1275 }
 0x4a5   :  { %947 = vadd.xlane.f32.xlu0 %v946_v6 }
 0x4a7   :  { %v5088_v7 = vpop.eup %4678 }
 0x4a8   :  { %v949_v8 = vsel %vm268_vm4, %v5088_v7, 0.0  ;;  %v1352_v14 = vpop.permute.xlu1 %1351 }
 0x4a9   :  { %950 = vadd.xlane.f32.xlu1 %v949_v8 }
 0x4ab   :  { %v5092_v9 = vpop.eup %4680 }
 0x4ac   :  { %v952_v10 = vsel %vm268_vm4, %v5092_v9, 0.0 }
 0x4ad   :  { %953 = vadd.xlane.f32.xlu0 %v952_v10 }
 0x4ba   :  { %1503 = vrot.lane.b32.xlu1 %v5000_v52, %s4782_s27 }
 0x4c3   :  { %1427 = vrot.lane.b32.xlu0 %v4982_v48, %s4782_s27 }
 0x4d5   :  { %v936_v15 = vpop.xlane.xlu0 %935 }
 0x4d6   :  { %4682 = vrcp.f32 %v936_v15 }
 0x4d9   :  { %v933_v16 = vpop.xlane.xlu1 %932 }
 0x4da   :  { %4684 = vrcp.f32 %v933_v16 }
 0x4e0   :  { %v4683_v17 = vpop.eup %4682 }
 0x4e1   :  { %v964_v18 = vmul.f32 %v4683_v17, %v5068_v34 }
 0x4e3   :  { %4317 = vmatmul.mubr.msk.f32.vlgmr.msra.gmra.mrb[18].mxu1 %vm268_vm4, %v964_v18 }
 0x4e4   :  { %v4685_v19 = vpop.eup %4684  ;;  %4325 = vmatpush3.msra.mxu1 %v1200_v12  ;;  %4326 = vmatprep.mubr.msk.f32.mxu1 %vm4777_vm3, %v4776_v40 }
 0x4e5   :  { %v963_v48 = vmul.f32 %v4685_v19, %v5072_v36  ;;  %4334 = vmatprep.subr.mxu1 %v4776_v40 }
 0x4e7   :  { %4312 = vmatmul.mubr.msk.f32.vlgmr.msra.gmra.mrb[2].mxu0 %vm268_vm4, %v963_v48 }
 0x4e8   :  { %4320 = vmatpush3.msra.mxu0 %v1124_v11  ;;  %4321 = vmatprep.mubr.msk.f32.mxu0 %vm4777_vm3, %v4776_v40 }
 0x4e9   :  { %4329 = vmatprep.subr.mxu0 %v4776_v40 }
 0x526   :  { %v939_v52 = vpop.xlane.xlu1 %938 }
 0x527   :  { %4686 = vrcp.f32 %v939_v52 }
 0x52a   :  { %v942_v20 = vpop.xlane.xlu0 %941 }
 0x52b   :  { %4688 = vrcp.f32 %v942_v20 }
 0x52e   :  { %v945_v21 = vpop.xlane.xlu1 %944 }
 0x52f   :  { %4690 = vrcp.f32 %v945_v21 }
 0x531   :  { %v4687_v22 = vpop.eup %4686 }
 0x532   :  { %v965_v23 = vmul.f32 %v4687_v22, %v5076_v54  ;;  %v948_v24 = vpop.xlane.xlu0 %947  ;;  %v1614_v54 = vld [vmem:[%s5554_s4 + $0x18] sm:$0xff] }
 0x533   :  { %4692 = vrcp.f32 %v948_v24  ;;  %v4577_v56 = vpack.c.bf16 %v1614_v54, %v1613_v53 }
 0x534   :  { %4322 = vmatmul.mubr.msk.f32.vlgmr.msra.gmra.mrb[4].mxu0 %vm268_vm4, %v965_v23 }
 0x535   :  { %v4689_v25 = vpop.eup %4688  ;;  %4330 = vmatpush3.msra.mxu0 %v1276_v13  ;;  %4331 = vmatprep.mubr.msk.f32.mxu0 %vm4777_vm3, %v4776_v40 }
 0x536   :  { %v966_v26 = vmul.f32 %v4689_v25, %v5080_v59  ;;  %v951_v27 = vpop.xlane.xlu1 %950  ;;  %4339 = vmatprep.subr.mxu0 %v4776_v40  ;;  %v1756_v25 = vld [vmem:[%s5560_s10 + $0x10] sm:$0xff] }
 0x537   :  { %4694 = vrcp.f32 %v951_v27  ;;  %v1757_v27 = vld [vmem:[%s5560_s10 + $0x18] sm:$0xff] }
 0x538   :  { %4327 = vmatmul.mubr.msk.f32.vlgmr.msra.gmra.mrb[20].mxu1 %vm268_vm4, %v966_v26 }
 0x539   :  { %v4691_v28 = vpop.eup %4690  ;;  %4335 = vmatpush3.msra.mxu1 %v1352_v14  ;;  %4336 = vmatprep.mubr.msk.f32.mxu1 %vm4777_vm3, %v4776_v40  ;;  %v3997_v14 = vld [vmem:[%s5555_s5] ss:$0 sm:$0xff] }
 0x53a   :  { %v967_v29 = vmul.f32 %v4691_v28, %v4675_v1  ;;  %v954_v30 = vpop.xlane.xlu0 %953  ;;  %4344 = vmatprep.subr.mxu1 %v4776_v40  ;;  %v1504_v34 = vpop.permute.xlu1 %1503  ;;  %v4585_v28 = vpack.c.bf16 %v1757_v27, %v1756_v25  ;;  %v4011_v25 = vld [vmem:[%s5552_s2 + $0x28] sm:$0xff] }
 0x53b   :  { %4696 = vrcp.f32 %v954_v30  ;;  %v1849_v30 = vld [vmem:[%s5562_s12 + $0x8] sm:$0xff] }
 0x53c   :  { %4332 = vmatmul.mubr.msk.f32.vlgmr.msra.gmra.mrb[6].mxu0 %vm268_vm4, %v967_v29  ;;  %v1848_v29 = vld [vmem:[%s5562_s12] sm:$0xff] }
 0x53d   :  { %v4693_v31 = vpop.eup %4692  ;;  %4341 = vmatprep.mubr.msk.f32.mxu0 %vm4777_vm3, %v4776_v40 }
 0x53e   :  { %v968_v32 = vmul.f32 %v4693_v31, %v4677_v5  ;;  %v1428_v33 = vpop.permute.xlu0 %1427  ;;  %v1850_v31 = vld [vmem:[%s5562_s12 + $0x10] sm:$0xff] }
 0x53f   :  { %4340 = vmatpush3.msra.mxu0 %v1428_v33  ;;  %v1851_v33 = vld [vmem:[%s5562_s12 + $0x18] sm:$0xff] }
 0x540   :  { %4337 = vmatmul.mubr.msk.f32.vlgmr.msra.gmra.mrb[22].mxu1 %vm268_vm4, %v968_v32  ;;  %4574 = vmatprep.subr.bf16.mxu0 %v4573_v50  ;;  %v4589_v32 = vpack.c.bf16 %v1849_v30, %v1848_v29 }
 0x541   :  { %v4695_v35 = vpop.eup %4694  ;;  %4345 = vmatpush3.msra.mxu1 %v1504_v34  ;;  %4346 = vmatprep.mubr.msk.f32.mxu1 %vm4777_vm3, %v4776_v40  ;;  %v4593_v34 = vpack.c.bf16 %v1851_v33, %v1850_v31 }
 0x542   :  { %v969_v36 = vmul.f32 %v4695_v35, %v5088_v7  ;;  %v1852_v35 = vld [vmem:[%s5562_s12 + $0x20] sm:$0xff] }
 0x544   :  { %4342 = vmatmul.mubr.msk.f32.vlgmr.msra.gmra.mrb[8].mxu0 %vm268_vm4, %v969_v36  ;;  %v1853_v36 = vld [vmem:[%s5562_s12 + $0x28] sm:$0xff] }
 0x545   :  { %v4697_v37 = vpop.eup %4696  ;;  %4576 = vmatpush3.bf16.msra.mxu0 %v4573_v50 }
 0x546   :  { %v970_v41 = vmul.f32 %v4697_v37, %v5092_v9  ;;  %4578 = vmatprep.subr.bf16.mxu0 %v4577_v56  ;;  %v4597_v37 = vpack.c.bf16 %v1853_v36, %v1852_v35 }
 0x548   :  { %4347 = vmatmul.mubr.msk.f32.vlgmr.msra.gmra.mrb[24].mxu1 %vm268_vm4, %v970_v41 }
 0x549   :  { %4580 = vmatpush3.bf16.msra.mxu0 %v4577_v56 }
 0x54a   :  { %4590 = vmatprep.subr.bf16.mxu0 %v4589_v32 }
 0x5b6   :  { %v1119_v42 = vpop.f32.mrb[18].mxu1 }
 0x5b7   :  { %v4318_v43 = vpop.f32.mrb[19].mxu1 }
 0x5ba   :  { %v1043_v44 = vpop.f32.mrb[2].mxu0 }
 0x5bb   :  { %v4313_v45 = vpop.f32.mrb[3].mxu0 }
 0x607   :  { %v1195_v49 = vpop.f32.mrb[4].mxu0 }
 0x608   :  { %1581 = vrot.lane.b32.xlu0 %v1195_v49, %s4783_s0  ;;  %v4323_v51 = vpop.f32.mrb[5].mxu0 }
 0x60b   :  { %v1271_v55 = vpop.f32.mrb[20].mxu1 }
 0x60c   :  { %1583 = vrot.lane.b32.xlu1 %v1271_v55, %s4783_s0  ;;  %v4328_v57 = vpop.f32.mrb[21].mxu1 }
 0x60f   :  { %v1347_v58 = vpop.f32.mrb[6].mxu0 }
 0x610   :  { %1589 = vrot.lane.b32.xlu0 %v1347_v58, %s5570_s1  ;;  %v4333_v59 = vpop.f32.mrb[7].mxu0 }
 0x611   :  { %v4000_v59 = vld [vmem:[%s5556_s6] ss:$0 sm:$0xff] }
 0x613   :  { %v1423_v60 = vpop.f32.mrb[22].mxu1 }
 0x614   :  { %1591 = vrot.lane.b32.xlu1 %v1423_v60, %s5570_s1  ;;  %v4338_v61 = vpop.f32.mrb[23].mxu1 }
 0x615   :  { %v4001_v61 = vld [vmem:[%s5557_s7] ss:$0 sm:$0xff] }
 0x617   :  { %v1499_v62 = vpop.f32.mrb[8].mxu0 }
 0x618   :  { %1597 = vrot.lane.b32.xlu0 %v1499_v62, %s5568_s21  ;;  %v4343_v63 = vpop.f32.mrb[9].mxu0 }
 0x61b   :  { %v1575_v0 = vpop.f32.mrb[24].mxu1 }
 0x61c   :  { %1599 = vrot.lane.b32.xlu1 %v1575_v0, %s5568_s21  ;;  %v4348_v1 = vpop.f32.mrb[25].mxu1 }
 0x67a   :  { %v1582_v2 = vpop.permute.xlu0 %1581 }
 0x67b   :  { %v1603_v5 = vsel %vm268_vm4, %v1043_v44, %v1582_v2 }
 0x67e   :  { %v1584_v3 = vpop.permute.xlu1 %1583 }
 0x67f   :  { %v1604_v10 = vsel %vm268_vm4, %v1119_v42, %v1584_v3 }
 0x682   :  { %v1590_v4 = vpop.permute.xlu0 %1589 }
 0x683   :  { %v1606_v6 = vsel %vm1605_vm5, %v1603_v5, %v1590_v4  ;;  %v1854_v5 = vld [vmem:[%s5562_s12 + $0x30] sm:$0xff] }
 0x686   :  { %v1592_v7 = vpop.permute.xlu1 %1591 }
 0x687   :  { %v1607_v11 = vsel %vm1605_vm5, %v1604_v10, %v1592_v7 }
 0x68a   :  { %v1598_v8 = vpop.permute.xlu0 %1597 }
 0x68b   :  { %v1609_v9 = vsel %vm1608_vm6, %v1606_v6, %v1598_v8  ;;  %v1855_v6 = vld [vmem:[%s5562_s12 + $0x38] sm:$0xff]  ;;  %v4002_v8 = vld [vmem:[%s5561_s11] ss:$0 sm:$0xff] }
 0x68c   :  { %4357 = vmatprep.mubr.msk.f32.mxu0 %vm170_vm2, %v1609_v9  ;;  %v4601_v7 = vpack.c.bf16 %v1855_v6, %v1854_v5 }
 0x68e   :  { %v1600_v12 = vpop.permute.xlu1 %1599 }
 0x68f   :  { %v1610_v13 = vsel %vm1608_vm6, %v1607_v11, %v1600_v12 }
 0x690   :  { %4358 = vmatmul.mubr.msk.f32.vlgmr.msra.gmra.mrb[10].mxu0 %vm170_vm2, %v1610_v13 }
 0x691   :  { %4592 = vmatpush3.bf16.msra.mxu0 %v4589_v32 }
 0x692   :  { %4594 = vmatprep.subr.bf16.mxu0 %v4593_v34 }
 0x695   :  { %4596 = vmatpush3.bf16.msra.mxu0 %v4593_v34 }
 0x696   :  { %4598 = vmatprep.subr.bf16.mxu0 %v4597_v37 }
 0x699   :  { %4600 = vmatpush3.bf16.msra.mxu0 %v4597_v37 }
 0x69a   :  { %4602 = vmatprep.subr.bf16.mxu0 %v4601_v7 }
 0x69d   :  { %4604 = vmatpush3.bf16.msra.mxu0 %v4601_v7 }
 0x69e   :  { %4411 = vmatprep.subr.mxu0 %v4776_v40 }
 0x763   :  { %v4359_v15 = vpop.f32.mrb[10].mxu0 }
 0x764   :  { %v1700_v16 = vadd.f32 %v4359_v15, %v3997_v14  ;;  %v1694_v17 = vpop.f32.mrb[11].mxu0  ;;  %v4005_v15 = vld [vmem:[%s5563_s13] ss:$0 sm:$0xff] }
 0x765   :  { %v1695_v18 = vadd.f32 %v3997_v14, %v1694_v17 }
 0x766   :  { %v1704_v19 = vadd.f32 %v4939_v38, %v1700_v16  ;;  %v1754_v38 = vld [vmem:[%s5560_s10] sm:$0xff] }
 0x767   :  { %v1703_v48 = vadd.f32 %v1695_v18, %v4941_v39  ;;  %v1755_v39 = vld [vmem:[%s5560_s10 + $0x8] sm:$0xff] }
 0x768   :  { %v1710_v52 = vsel %vm170_vm2, %v1704_v19, 0.0  ;;  %v1717_v23 = vmul.f32 %v1704_v19, %v1704_v19  ;;  %v4581_v26 = vpack.c.bf16 %v1755_v39, %v1754_v38  ;;  %v4010_v39 = vld [vmem:[%s5552_s2 + $0x20] sm:$0xff] }
 0x769   :  { %1711 = vadd.xlane.f32.xlu1 %v1710_v52  ;;  %v1707_v20 = vsel %vm170_vm2, %v1703_v48, 0.0  ;;  %v1716_v21 = vmul.f32 %v1703_v48, %v1703_v48  ;;  %v4605_v27 = vpack.c.bf16 %v4011_v25, %v4010_v39 }
 0x76a   :  { %1708 = vadd.xlane.f32.xlu0 %v1707_v20  ;;  %v1721_v24 = vsel %vm170_vm2, %v1717_v23, 0.0  ;;  %4582 = vmatprep.subr.bf16.mxu1 %v4581_v26 }
 0x76b   :  { %v1718_v22 = vsel %vm170_vm2, %v1716_v21, 0.0  ;;  %4584 = vmatpush3.bf16.msra.mxu1 %v4581_v26  ;;  %v4012_v26 = vld [vmem:[%s5552_s2 + $0x30] sm:$0xff] }
 0x76c   :  { %4586 = vmatprep.subr.bf16.mxu1 %v4585_v28 }
 0x76e   :  { %1719 = vadd.xlane.f32.xlu0 %v1718_v22 }
 0x76f   :  { %4588 = vmatpush3.bf16.msra.mxu1 %v4585_v28  ;;  %v4013_v28 = vld [vmem:[%s5552_s2 + $0x38] sm:$0xff] }
 0x770   :  { %v4609_v29 = vpack.c.bf16 %v4013_v28, %v4012_v26  ;;  %4606 = vmatprep.subr.bf16.mxu1 %v4605_v27 }
 0x772   :  { %1722 = vadd.xlane.f32.xlu0 %v1721_v24 }
 0x7f6   :  { %v1712_v43 = vpop.xlane.xlu1 %1711 }
 0x7f7   :  { %v1709_v41 = vpop.xlane.xlu0 %1708  ;;  %v1715_v45 = vmul.f32 0.03125, %v1712_v43 }
 0x7f8   :  { %v1714_v42 = vmul.f32 0.03125, %v1709_v41 }
 0x7f9   :  { %v1727_v51 = vmul.f32 %v1715_v45, %v1715_v45  ;;  %v1731_v62 = vsub.f32 %v1704_v19, %v1715_v45 }
 0x7fa   :  { %v1726_v46 = vmul.f32 %v1714_v42, %v1714_v42  ;;  %v1730_v57 = vsub.f32 %v1703_v48, %v1714_v42 }
 0x7fb   :  { %v1720_v44 = vpop.xlane.xlu0 %1719 }
 0x7fc   :  { %v1724_v47 = vmul.f32 0.03125, %v1720_v44 }
 0x7fe   :  { %v1728_v49 = vsub.f32 %v1724_v47, %v1726_v46 }
 0x7ff   :  { %v1723_v50 = vpop.xlane.xlu0 %1722 }
 0x800   :  { %v1732_v53 = vadd.f32 1e-05, %v1728_v49  ;;  %v1725_v54 = vmul.f32 0.03125, %v1723_v50 }
 0x802   :  { %4698 = vrsqrt.f32 %v1732_v53  ;;  %v1729_v55 = vsub.f32 %v1725_v54, %v1727_v51  ;;  %v4008_v51 = vld [vmem:[%s5558_s8] ss:$0 sm:$0xff] }
 0x804   :  { %v1733_v56 = vadd.f32 1e-05, %v1729_v55 }
 0x806   :  { %4700 = vrsqrt.f32 %v1733_v56  ;;  %v4009_v56 = vld [vmem:[%s5559_s9] ss:$0 sm:$0xff] }
 0x80c   :  { %v4699_v58 = vpop.eup %4698 }
 0x80d   :  { %v1736_v60 = vmul.f32 %v4699_v58, %v1730_v57 }
 0x80f   :  { %v1744_v63 = vmul.f32 %v4000_v59, %v1736_v60 }
 0x810   :  { %v4701_v0 = vpop.eup %4700 }
 0x811   :  { %v1737_v1 = vmul.f32 %v4701_v0, %v1731_v62  ;;  %v1752_v2 = vadd.f32 %v4001_v61, %v1744_v63 }
 0x813   :  { %v1745_v3 = vmul.f32 %v4000_v59, %v1737_v1  ;;  %4368 = vmatprep.mubr.msk.f32.mxu1 %vm170_vm2, %v1752_v2 }
 0x815   :  { %v1753_v4 = vadd.f32 %v4001_v61, %v1745_v3  ;;  %v4015_v61 = vld [vmem:[%s5553_s3 + $0x1] ss:$0 sm:$0xff] }
 0x817   :  { %4369 = vmatmul.mubr.msk.f32.vlgmr.msra.gmra.mrb[26].mxu1 %vm170_vm2, %v1753_v4 }
 0x818   :  { %4608 = vmatpush3.bf16.msra.mxu1 %v4605_v27 }
 0x819   :  { %4610 = vmatprep.subr.bf16.mxu1 %v4609_v29 }
 0x81c   :  { %4612 = vmatpush3.bf16.msra.mxu1 %v4609_v29 }
 0x81d   :  { %4401 = vmatprep.subr.mxu1 %v4776_v40 }
 0x8ea   :  { %v4370_v9 = vpop.f32.mrb[26].mxu1 }
 0x8eb   :  { %v1843_v10 = vadd.f32 %v4370_v9, %v4002_v8  ;;  %v1837_v11 = vpop.f32.mrb[27].mxu1 }
 0x8ec   :  { %v1838_v12 = vadd.f32 %v4002_v8, %v1837_v11 }
 0x8ed   :  { %v1847_v14 = vmax.f32 %v1843_v10, 0.0 }
 0x8ee   :  { %v1846_v13 = vmax.f32 %v1838_v12, 0.0 }
 0x8f0   :  { %4387 = vmatprep.mubr.msk.f32.mxu0 %vm1863_vm7, %v1846_v13 }
 0x8f1   :  { %4388 = vmatmul.mubr.msk.f32.vlgmr.msra.gmra.mrb[12].mxu0 %vm1863_vm7, %v1847_v14 }
 0x8f2   :  { %4413 = vmatprep.mubr.msk.f32.mxu0 %vm4777_vm3, %v4776_v40 }
 0x9c4   :  { %v4389_v16 = vpop.f32.mrb[12].mxu0 }
 0x9c5   :  { %v1942_v17 = vadd.f32 %v4389_v16, %v4005_v15  ;;  %v1936_v18 = vpop.f32.mrb[13].mxu0 }
 0x9c6   :  { %v1937_v19 = vadd.f32 %v4005_v15, %v1936_v18 }
 0x9c7   :  { %v1946_v48 = vadd.f32 %v1942_v17, %v1753_v4 }
 0x9c8   :  { %v1945_v52 = vadd.f32 %v1937_v19, %v1752_v2 }
 0x9c9   :  { %v1952_v20 = vsel %vm170_vm2, %v1946_v48, 0.0  ;;  %v1958_v21 = vmul.f32 %v1946_v48, %v1946_v48 }
 0x9ca   :  { %1953 = vadd.xlane.f32.xlu0 %v1952_v20  ;;  %v1949_v22 = vsel %vm170_vm2, %v1945_v52, 0.0  ;;  %v1957_v23 = vmul.f32 %v1945_v52, %v1945_v52 }
 0x9cb   :  { %1950 = vadd.xlane.f32.xlu1 %v1949_v22  ;;  %v1962_v24 = vsel %vm170_vm2, %v1958_v21, 0.0 }
 0x9cc   :  { %v1959_v38 = vsel %vm170_vm2, %v1957_v23, 0.0 }
 0x9ce   :  { %1963 = vadd.xlane.f32.xlu0 %v1962_v24 }
 0x9cf   :  { %1960 = vadd.xlane.f32.xlu1 %v1959_v38 }
 0xa57   :  { %v1954_v30 = vpop.xlane.xlu0 %1953 }
 0xa58   :  { %v1956_v31 = vmul.f32 0.03125, %v1954_v30  ;;  %v1951_v32 = vpop.xlane.xlu1 %1950 }
 0xa59   :  { %v1955_v33 = vmul.f32 0.03125, %v1951_v32 }
 0xa5a   :  { %v1968_v35 = vmul.f32 %v1956_v31, %v1956_v31  ;;  %v1972_v47 = vsub.f32 %v1946_v48, %v1956_v31 }
 0xa5b   :  { %v1964_v34 = vpop.xlane.xlu0 %1963  ;;  %v1967_v41 = vmul.f32 %v1955_v33, %v1955_v33  ;;  %v1971_v50 = vsub.f32 %v1945_v52, %v1955_v33 }
 0xa5c   :  { %v1966_v36 = vmul.f32 0.03125, %v1964_v34  ;;  %v1961_v37 = vpop.xlane.xlu1 %1960 }
 0xa5d   :  { %v1965_v42 = vmul.f32 0.03125, %v1961_v37 }
 0xa5e   :  { %v1970_v43 = vsub.f32 %v1966_v36, %v1968_v35 }
 0xa5f   :  { %v1969_v44 = vsub.f32 %v1965_v42, %v1967_v41 }
 0xa60   :  { %v1974_v45 = vadd.f32 1e-05, %v1970_v43 }
 0xa61   :  { %v1973_v46 = vadd.f32 1e-05, %v1969_v44 }
 0xa62   :  { %4702 = vrsqrt.f32 %v1974_v45 }
 0xa63   :  { %4704 = vrsqrt.f32 %v1973_v46 }
 0xa6c   :  { %v4703_v49 = vpop.eup %4702 }
 0xa6d   :  { %v4705_v53 = vpop.eup %4704  ;;  %v1978_v54 = vmul.f32 %v4703_v49, %v1972_v47 }
 0xa6e   :  { %v1977_v55 = vmul.f32 %v4705_v53, %v1971_v50 }
 0xa6f   :  { %v1986_v57 = vmul.f32 %v4008_v51, %v1978_v54 }
 0xa70   :  { %v1985_v58 = vmul.f32 %v4008_v51, %v1977_v55 }
 0xa71   :  { %v5245_v60 = vadd.f32 %v4009_v56, %v1986_v57 }
 0xa72   :  { %v5243_v59 = vadd.f32 %v4009_v56, %v1985_v58 }
 0xa74   :  { %4398 = vmatprep.mubr.msk.f32.mxu1 %vm170_vm2, %v5243_v59 }
 0xa75   :  { %4399 = vmatmul.mubr.msk.f32.vlgmr.msra.gmra.mrb[28].mxu1 %vm170_vm2, %v5245_v60 }
 0xa76   :  { %4403 = vmatprep.mubr.msk.f32.mxu1 %vm4777_vm3, %v4776_v40 }
 0xb48   :  { %v4400_v62 = vpop.f32.mrb[28].mxu1 }
 0xb49   :  { %v5256_v63 = vadd.f32 %v4400_v62, %v4015_v61  ;;  %v2080_v0 = vpop.f32.mrb[29].mxu1 }
 0xb4a   :  { %v5258_v1 = vadd.f32 %v4015_v61, %v2080_v0 }
 0xb4b   :  { %2093 = vrot.lane.b32.xlu0 %v5256_v63, %s4779_s24 }
 0xb4c   :  { %2091 = vrot.lane.b32.xlu1 %v5258_v1, %s4779_s24 }
 0xb4f   :  { %2099 = vrot.lane.b32.xlu0 %v5258_v1, %s4780_s25 }
 0xb50   :  { %2095 = vrot.lane.b32.xlu1 %v5258_v1, %s4778_s22 }
 0xb53   :  { %2103 = vrot.lane.b32.xlu0 %v5258_v1, %s4781_s26 }
 0xb54   :  { %2097 = vrot.lane.b32.xlu1 %v5256_v63, %s4778_s22 }
 0xb58   :  { %2101 = vrot.lane.b32.xlu1 %v5256_v63, %s4780_s25 }
 0xb5c   :  { %2179 = vrot.lane.b32.xlu1 %v5256_v63, %s4781_s26 }
 0xbbd   :  { %v5276_v2 = vpop.permute.xlu0 %2093 }
 0xbbe   :  { %2331 = vrot.lane.b32.xlu1 %v5276_v2, %s4781_s26  ;;  %v5280_v3 = vpop.permute.xlu1 %2091 }
 0xbbf   :  { %2255 = vrot.lane.b32.xlu0 %v5280_v3, %s4781_s26 }
 0xbc1   :  { %v5284_v4 = vpop.permute.xlu0 %2099 }
 0xbc2   :  { %v5286_v5 = vpop.permute.xlu1 %2095 }
 0xbc3   :  { %2407 = vrot.lane.b32.xlu0 %v5286_v5, %s4781_s26 }
 0xbc5   :  { %v2104_v6 = vpop.permute.xlu0 %2103 }
 0xbc6   :  { %4402 = vmatpush3.xpose.msk.msra.mxu1 %vm268_vm4, %v2104_v6  ;;  %v5291_v7 = vpop.permute.xlu1 %2097 }
 0xbc7   :  { %2559 = vrot.lane.b32.xlu0 %v5284_v4, %s4781_s26  ;;  %2483 = vrot.lane.b32.xlu1 %v5291_v7, %s4781_s26 }
 0xbc8   :  { %4406 = vmatprep.subr.mxu1 %v4776_v40 }
 0xbc9   :  { %4404 = vmatmul.mubr.msk.f32.vlgmr.msra.gmra.mrb[30].mxu1 %vm268_vm4, %v5258_v1 }
 0xbca   :  { %v5300_v8 = vpop.permute.xlu1 %2101  ;;  %4408 = vmatprep.mubr.msk.f32.mxu1 %vm4777_vm3, %v4776_v40 }
 0xbcb   :  { %2635 = vrot.lane.b32.xlu1 %v5300_v8, %s4781_s26 }
 0xbce   :  { %v2180_v9 = vpop.permute.xlu1 %2179 }
 0xbcf   :  { %4407 = vmatpush3.xpose.msk.msra.mxu1 %vm268_vm4, %v2180_v9 }
 0xbd0   :  { %4416 = vmatprep.subr.mxu1 %v4776_v40 }
 0xbd2   :  { %4409 = vmatmul.mubr.msk.f32.vlgmr.msra.gmra.mrb[32].mxu1 %vm268_vm4, %v5256_v63 }
 0xbd3   :  { %4418 = vmatprep.mubr.msk.f32.mxu1 %vm4777_vm3, %v4776_v40 }
 0xc30   :  { %v2332_v10 = vpop.permute.xlu1 %2331 }
 0xc31   :  { %v2256_v11 = vpop.permute.xlu0 %2255  ;;  %4417 = vmatpush3.xpose.msk.msra.mxu1 %vm268_vm4, %v2332_v10 }
 0xc32   :  { %4412 = vmatpush3.xpose.msk.msra.mxu0 %vm268_vm4, %v2256_v11  ;;  %4426 = vmatprep.subr.mxu1 %v4776_v40 }
 0xc33   :  { %4421 = vmatprep.subr.mxu0 %v4776_v40 }
 0xc34   :  { %4419 = vmatmul.mubr.msk.f32.vlgmr.msra.gmra.mrb[34].mxu1 %vm268_vm4, %v5276_v2 }
 0xc35   :  { %4414 = vmatmul.mubr.msk.f32.vlgmr.msra.gmra.mrb[14].mxu0 %vm268_vm4, %v5280_v3  ;;  %v2408_v12 = vpop.permute.xlu0 %2407  ;;  %4428 = vmatprep.mubr.msk.f32.mxu1 %vm4777_vm3, %v4776_v40 }
 0xc36   :  { %4422 = vmatpush3.xpose.msk.msra.mxu0 %vm268_vm4, %v2408_v12  ;;  %4423 = vmatprep.mubr.msk.f32.mxu0 %vm4777_vm3, %v4776_v40 }
 0xc37   :  { %4431 = vmatprep.subr.mxu0 %v4776_v40 }
 0xc39   :  { %4424 = vmatmul.mubr.msk.f32.vlgmr.msra.gmra.mrb[16].mxu0 %vm268_vm4, %v5286_v5  ;;  %v2560_v13 = vpop.permute.xlu0 %2559  ;;  %v2484_v14 = vpop.permute.xlu1 %2483 }
 0xc3a   :  { %4427 = vmatpush3.xpose.msk.msra.mxu1 %vm268_vm4, %v2484_v14  ;;  %4432 = vmatpush3.xpose.msk.msra.mxu0 %vm268_vm4, %v2560_v13 }
 0xc3b   :  { %4433 = vmatprep.mubr.msk.f32.mxu0 %vm4777_vm3, %v4776_v40  ;;  %4436 = vmatprep.subr.mxu1 %v4776_v40 }
 0xc3c   :  { %4441 = vmatprep.subr.mxu0 %v4776_v40 }
 0xc3d   :  { %4429 = vmatmul.mubr.msk.f32.vlgmr.msra.gmra.mrb[36].mxu1 %vm268_vm4, %v5291_v7  ;;  %4434 = vmatmul.mubr.msk.f32.vlgmr.msra.gmra.mrb[18].mxu0 %vm268_vm4, %v5284_v4  ;;  %v2636_v15 = vpop.permute.xlu1 %2635 }
 0xc3e   :  { %4437 = vmatpush3.xpose.msk.msra.mxu1 %vm268_vm4, %v2636_v15  ;;  %4438 = vmatprep.mubr.msk.f32.mxu1 %vm4777_vm3, %v4776_v40 }
 0xc3f   :  { %4446 = vmatprep.subr.mxu1 %v4776_v40  ;;  %4443 = vmatprep.mubr.msk.f32.mxu0 %vm4777_vm3, %v4776_v40 }
 0xc41   :  { %4439 = vmatmul.mubr.msk.f32.vlgmr.msra.gmra.mrb[38].mxu1 %vm268_vm4, %v5300_v8 }
 0xc42   :  { %4448 = vmatprep.mubr.msk.f32.mxu1 %vm4777_vm3, %v4776_v40 }
 0xc9c   :  { %v2175_v16 = vpop.f32.mrb[30].mxu1 }
 0xc9d   :  { %v2711_v17 = vmul.f32 0.35355338, %v2175_v16  ;;  %v4405_v18 = vpop.f32.mrb[31].mxu1 }
 0xc9f   :  { %v2719_v19 = vsel %vm268_vm4, %v2711_v17, -inf }
 0xca0   :  { %2720 = vmax.xlane.f32.xlu0 %v2719_v19 }
 0xca5   :  { %v2251_v48 = vpop.f32.mrb[32].mxu1 }
 0xca6   :  { %v2712_v52 = vmul.f32 0.35355338, %v2251_v48  ;;  %v4410_v20 = vpop.f32.mrb[33].mxu1 }
 0xca8   :  { %v2722_v21 = vsel %vm268_vm4, %v2712_v52, -inf }
 0xca9   :  { %2723 = vmax.xlane.f32.xlu1 %v2722_v21 }
 0xd07   :  { %v2403_v22 = vpop.f32.mrb[34].mxu1 }
 0xd08   :  { %v2327_v23 = vpop.f32.mrb[14].mxu0  ;;  %v4420_v24 = vpop.f32.mrb[35].mxu1  ;;  %v2714_v25 = vmul.f32 0.35355338, %v2403_v22 }
 0xd09   :  { %v2713_v38 = vmul.f32 0.35355338, %v2327_v23  ;;  %v4415_v39 = vpop.f32.mrb[15].mxu0 }
 0xd0a   :  { %v2728_v31 = vsel %vm268_vm4, %v2714_v25, -inf }
 0xd0b   :  { %v2725_v26 = vsel %vm268_vm4, %v2713_v38, -inf }
 0xd0c   :  { %2726 = vmax.xlane.f32.xlu0 %v2725_v26  ;;  %v2479_v27 = vpop.f32.mrb[16].mxu0 }
 0xd0d   :  { %v2715_v28 = vmul.f32 0.35355338, %v2479_v27  ;;  %v4425_v29 = vpop.f32.mrb[17].mxu0 }
 0xd0f   :  { %v2731_v30 = vsel %vm268_vm4, %v2715_v28, -inf }
 0xd10   :  { %v2631_v32 = vpop.f32.mrb[18].mxu0  ;;  %2732 = vmax.xlane.f32.xlu1 %v2731_v30  ;;  %2729 = vmax.xlane.f32.xlu0 %v2728_v31  ;;  %v2555_v33 = vpop.f32.mrb[36].mxu1 }
 0xd11   :  { %v2717_v34 = vmul.f32 0.35355338, %v2631_v32  ;;  %v2716_v35 = vmul.f32 0.35355338, %v2555_v33  ;;  %v4430_v36 = vpop.f32.mrb[37].mxu1  ;;  %v4435_v37 = vpop.f32.mrb[19].mxu0 }
 0xd13   :  { %v2737_v41 = vsel %vm268_vm4, %v2717_v34, -inf  ;;  %v2734_v42 = vsel %vm268_vm4, %v2716_v35, -inf }
 0xd14   :  { %2738 = vmax.xlane.f32.xlu1 %v2737_v41  ;;  %2735 = vmax.xlane.f32.xlu0 %v2734_v42  ;;  %v2707_v43 = vpop.f32.mrb[38].mxu1 }
 0xd15   :  { %v2718_v44 = vmul.f32 0.35355338, %v2707_v43  ;;  %v4440_v45 = vpop.f32.mrb[39].mxu1 }
 0xd17   :  { %v2740_v46 = vsel %vm268_vm4, %v2718_v44, -inf }
 0xd18   :  { %2741 = vmax.xlane.f32.xlu0 %v2740_v46 }
 0xd25   :  { %2807 = vrot.lane.b32.xlu1 %v5258_v1, %s4782_s27 }
 0xd29   :  { %2959 = vrot.lane.b32.xlu1 %v5280_v3, %s4782_s27 }
 0xd2d   :  { %3035 = vrot.lane.b32.xlu1 %v5276_v2, %s4782_s27  ;;  %v2721_v50 = vpop.xlane.xlu0 %2720 }
 0xd2e   :  { %2883 = vrot.lane.b32.xlu0 %v5256_v63, %s4782_s27  ;;  %v2743_v51 = vsub.f32 %v2711_v17, %v2721_v50 }
 0xd30   :  { %v2751_v54 = vmul.f32 1.442695, %v2743_v51 }
 0xd31   :  { %3187 = vrot.lane.b32.xlu1 %v5291_v7, %s4782_s27 }
 0xd32   :  { %3111 = vrot.lane.b32.xlu0 %v5286_v5, %s4782_s27 }
 0xd36   :  { %v2724_v47 = vpop.xlane.xlu1 %2723 }
 0xd37   :  { %v2744_v49 = vsub.f32 %v2712_v52, %v2724_v47 }
 0xd39   :  { %v2753_v53 = vmul.f32 1.442695, %v2744_v49 }
 0xd3b   :  { %4706 = vpow2.f32 %v2753_v53 }
 0xd3c   :  { %4708 = vpow2.f32 %v2751_v54 }
 0xd45   :  { %v5368_v55 = vpop.eup %4706 }
 0xd46   :  { %v2770_v56 = vsel %vm268_vm4, %v5368_v55, 0.0  ;;  %v5372_v57 = vpop.eup %4708 }
 0xd47   :  { %v2767_v58 = vsel %vm268_vm4, %v5372_v57, 0.0 }
 0xd51   :  { %2771 = vadd.xlane.f32.xlu0 %v2770_v56 }
 0xd55   :  { %2768 = vadd.xlane.f32.xlu1 %v2767_v58 }
 0xd99   :  { %v2727_v61 = vpop.xlane.xlu0 %2726 }
 0xd9a   :  { %v2745_v62 = vsub.f32 %v2713_v38, %v2727_v61 }
 0xd9c   :  { %v2755_v63 = vmul.f32 1.442695, %v2745_v62 }
 0xd9d   :  { %v2730_v0 = vpop.xlane.xlu0 %2729  ;;  %v2733_v1 = vpop.xlane.xlu1 %2732 }
 0xd9e   :  { %4710 = vpow2.f32 %v2755_v63  ;;  %v2746_v2 = vsub.f32 %v2714_v25, %v2730_v0  ;;  %v2747_v3 = vsub.f32 %v2715_v28, %v2733_v1 }
 0xda0   :  { %v2757_v5 = vmul.f32 1.442695, %v2746_v2  ;;  %v2759_v6 = vmul.f32 1.442695, %v2747_v3  ;;  %v4042_v2 = vld [vmem:[%s5554_s4 + $0x20] sm:$0xff]  ;;  %v4043_v3 = vld [vmem:[%s5554_s4 + $0x28] sm:$0xff] }
 0xda1   :  { %v2736_v7 = vpop.xlane.xlu0 %2735  ;;  %v2739_v9 = vpop.xlane.xlu1 %2738 }
 0xda2   :  { %4712 = vpow2.f32 %v2757_v5  ;;  %v2748_v10 = vsub.f32 %v2716_v35, %v2736_v7  ;;  %v2749_v11 = vsub.f32 %v2717_v34, %v2739_v9  ;;  %v4613_v5 = vpack.c.bf16 %v4043_v3, %v4042_v2  ;;  %v4045_v7 = vld [vmem:[%s5554_s4 + $0x38] sm:$0xff] }
 0xda3   :  { %4714 = vpow2.f32 %v2759_v6  ;;  %v4044_v6 = vld [vmem:[%s5554_s4 + $0x30] sm:$0xff]  ;;  %s5575_s4 = smov 24  }
 0xda4   :  { %v2761_v12 = vmul.f32 1.442695, %v2748_v10  ;;  %v2763_v13 = vmul.f32 1.442695, %v2749_v11  ;;  %v4617_v9 = vpack.c.bf16 %v4045_v7, %v4044_v6 }
 0xda5   :  { %v2742_v14 = vpop.xlane.xlu0 %2741  ;;  %v2808_v15 = vpop.permute.xlu1 %2807 }
 0xda6   :  { %4716 = vpow2.f32 %v2761_v12  ;;  %v2750_v16 = vsub.f32 %v2718_v44, %v2742_v14  ;;  %4442 = vmatpush3.msra.mxu0 %v2808_v15 }
 0xda7   :  { %4718 = vpow2.f32 %v2763_v13  ;;  %4451 = vmatprep.subr.mxu0 %v4776_v40 }
 0xda8   :  { %v4711_v17 = vpop.eup %4710  ;;  %v2765_v18 = vmul.f32 1.442695, %v2750_v16 }
 0xda9   :  { %v2884_v19 = vpop.permute.xlu0 %2883  ;;  %v2773_v48 = vsel %vm268_vm4, %v4711_v17, 0.0  ;;  %v2960_v27 = vpop.permute.xlu1 %2959 }
 0xdaa   :  { %4720 = vpow2.f32 %v2765_v18  ;;  %2774 = vadd.xlane.f32.xlu1 %v2773_v48  ;;  %4447 = vmatpush3.msra.mxu1 %v2884_v19 }
 0xdab   :  { %4456 = vmatprep.subr.mxu1 %v4776_v40 }
 0xdac   :  { %v4713_v52 = vpop.eup %4712 }
 0xdad   :  { %v4715_v20 = vpop.eup %4714  ;;  %v2776_v21 = vsel %vm268_vm4, %v4713_v52, 0.0  ;;  %v3036_v28 = vpop.permute.xlu1 %3035 }
 0xdae   :  { %2777 = vadd.xlane.f32.xlu0 %v2776_v21  ;;  %v2779_v22 = vsel %vm268_vm4, %v4715_v20, 0.0  ;;  %v3112_v29 = vpop.permute.xlu0 %3111 }
 0xdaf   :  { %2780 = vadd.xlane.f32.xlu1 %v2779_v22 }
 0xdb0   :  { %v4717_v23 = vpop.eup %4716 }
 0xdb1   :  { %v4719_v24 = vpop.eup %4718  ;;  %v2782_v38 = vsel %vm268_vm4, %v4717_v23, 0.0  ;;  %v3188_v30 = vpop.permute.xlu1 %3187 }
 0xdb2   :  { %2783 = vadd.xlane.f32.xlu0 %v2782_v38  ;;  %v2785_v39 = vsel %vm268_vm4, %v4719_v24, 0.0 }
 0xdb3   :  { %2786 = vadd.xlane.f32.xlu1 %v2785_v39 }
 0xdb4   :  { %v5383_v25 = vpop.eup %4720 }
 0xdb5   :  { %v2788_v26 = vsel %vm268_vm4, %v5383_v25, 0.0 }
 0xdb6   :  { %2789 = vadd.xlane.f32.xlu0 %v2788_v26 }
 0xdc4   :  { %3339 = vrot.lane.b32.xlu1 %v5300_v8, %s4782_s27 }
 0xdcc   :  { %3263 = vrot.lane.b32.xlu0 %v5284_v4, %s4782_s27 }
 0xdde   :  { %v2772_v31 = vpop.xlane.xlu0 %2771 }
 0xddf   :  { %4722 = vrcp.f32 %v2772_v31 }
 0xde2   :  { %v2769_v32 = vpop.xlane.xlu1 %2768 }
 0xde3   :  { %4724 = vrcp.f32 %v2769_v32 }
 0xde9   :  { %v4723_v33 = vpop.eup %4722 }
 0xdea   :  { %v2800_v34 = vmul.f32 %v4723_v33, %v5368_v55 }
 0xdec   :  { %4449 = vmatmul.mubr.msk.f32.vlgmr.msra.gmra.mrb[40].mxu1 %vm268_vm4, %v2800_v34 }
 0xded   :  { %v4725_v35 = vpop.eup %4724  ;;  %4457 = vmatpush3.msra.mxu1 %v3036_v28  ;;  %4458 = vmatprep.mubr.msk.f32.mxu1 %vm4777_vm3, %v4776_v40 }
 0xdee   :  { %v2799_v4 = vmul.f32 %v4725_v35, %v5372_v57  ;;  %4466 = vmatprep.subr.mxu1 %v4776_v40 }
 0xdf0   :  { %4444 = vmatmul.mubr.msk.f32.vlgmr.msra.gmra.mrb[20].mxu0 %vm268_vm4, %v2799_v4 }
 0xdf1   :  { %4452 = vmatpush3.msra.mxu0 %v2960_v27  ;;  %4453 = vmatprep.mubr.msk.f32.mxu0 %vm4777_vm3, %v4776_v40 }
 0xdf2   :  { %4461 = vmatprep.subr.mxu0 %v4776_v40 }
 0xe37   :  { %v2775_v8 = vpop.xlane.xlu1 %2774 }
 0xe38   :  { %4726 = vrcp.f32 %v2775_v8 }
 0xe3b   :  { %v2778_v36 = vpop.xlane.xlu0 %2777 }
 0xe3c   :  { %4728 = vrcp.f32 %v2778_v36  ;;  %v2781_v37 = vpop.xlane.xlu1 %2780 }
 0xe3d   :  { %4730 = vrcp.f32 %v2781_v37 }
 0xe3f   :  { %v2784_v41 = vpop.xlane.xlu0 %2783 }
 0xe40   :  { %4732 = vrcp.f32 %v2784_v41  ;;  %v2787_v42 = vpop.xlane.xlu1 %2786 }
 0xe41   :  { %4734 = vrcp.f32 %v2787_v42 }
 0xe42   :  { %v4727_v43 = vpop.eup %4726 }
 0xe43   :  { %v2801_v44 = vmul.f32 %v4727_v43, %v4711_v17  ;;  %v2790_v45 = vpop.xlane.xlu0 %2789 }
 0xe44   :  { %4736 = vrcp.f32 %v2790_v45  ;;  %v3340_v57 = vpop.permute.xlu1 %3339 }
 0xe45   :  { %4454 = vmatmul.mubr.msk.f32.vlgmr.msra.gmra.mrb[22].mxu0 %vm268_vm4, %v2801_v44  ;;  %v4056_v44 = vld [vmem:[%s5560_s10 + $0x30] sm:$0xff] }
 0xe46   :  { %v4729_v46 = vpop.eup %4728  ;;  %4462 = vmatpush3.msra.mxu0 %v3112_v29  ;;  %4463 = vmatprep.mubr.msk.f32.mxu0 %vm4777_vm3, %v4776_v40 }
 0xe47   :  { %v4731_v47 = vpop.eup %4730  ;;  %v2802_v49 = vmul.f32 %v4729_v46, %v4713_v52  ;;  %4471 = vmatprep.subr.mxu0 %v4776_v40  ;;  %v3264_v51 = vpop.permute.xlu0 %3263  ;;  %v4057_v46 = vld [vmem:[%s5560_s10 + $0x38] sm:$0xff] }
 0xe48   :  { %v2803_v50 = vmul.f32 %v4731_v47, %v4715_v20  ;;  %v4625_v47 = vpack.c.bf16 %v4057_v46, %v4056_v44  ;;  %v3856_v44 = vld [vmem:[%s5564_s14 + $0x10] sm:$0xff] }
 0xe49   :  { %4459 = vmatmul.mubr.msk.f32.vlgmr.msra.gmra.mrb[42].mxu1 %vm268_vm4, %v2802_v49  ;;  %v4062_v49 = vld [vmem:[%s5562_s12 + $0x40] sm:$0xff] }
 0xe4a   :  { %v4733_v53 = vpop.eup %4732  ;;  %4464 = vmatmul.mubr.msk.f32.vlgmr.msra.gmra.mrb[24].mxu0 %vm268_vm4, %v2803_v50  ;;  %4467 = vmatpush3.msra.mxu1 %v3188_v30  ;;  %v4047_v30 = vld [vmem:[%s5555_s5 + $0x1] ss:$0 sm:$0xff]  ;;  %v4063_v50 = vld [vmem:[%s5562_s12 + $0x48] sm:$0xff] }
 0xe4b   :  { %v4735_v54 = vpop.eup %4734  ;;  %v2804_v55 = vmul.f32 %v4733_v53, %v4717_v23  ;;  %4472 = vmatpush3.msra.mxu0 %v3264_v51  ;;  %4468 = vmatprep.mubr.msk.f32.mxu1 %vm4777_vm3, %v4776_v40  ;;  %v4064_v51 = vld [vmem:[%s5562_s12 + $0x50] sm:$0xff]  ;;  %v4629_v53 = vpack.c.bf16 %v4063_v50, %v4062_v49 }
 0xe4c   :  { %v2805_v56 = vmul.f32 %v4735_v54, %v4719_v24  ;;  %4473 = vmatprep.mubr.msk.f32.mxu0 %vm4777_vm3, %v4776_v40  ;;  %4476 = vmatprep.subr.mxu1 %v4776_v40  ;;  %v4065_v54 = vld [vmem:[%s5562_s12 + $0x58] sm:$0xff] }
 0xe4d   :  { %4469 = vmatmul.mubr.msk.f32.vlgmr.msra.gmra.mrb[44].mxu1 %vm268_vm4, %v2804_v55  ;;  %4614 = vmatprep.subr.bf16.mxu0 %v4613_v5  ;;  %v4633_v55 = vpack.c.bf16 %v4065_v54, %v4064_v51 }
 0xe4e   :  { %v4737_v58 = vpop.eup %4736  ;;  %4474 = vmatmul.mubr.msk.f32.vlgmr.msra.gmra.mrb[26].mxu0 %vm268_vm4, %v2805_v56  ;;  %4477 = vmatpush3.msra.mxu1 %v3340_v57  ;;  %v4066_v56 = vld [vmem:[%s5562_s12 + $0x60] sm:$0xff]  ;;  %v4067_v57 = vld [vmem:[%s5562_s12 + $0x68] sm:$0xff] }
 0xe4f   :  { %v2806_v61 = vmul.f32 %v4737_v58, %v5383_v25  ;;  %4478 = vmatprep.mubr.msk.f32.mxu1 %vm4777_vm3, %v4776_v40  ;;  %4616 = vmatpush3.bf16.msra.mxu0 %v4613_v5  ;;  %v4637_v58 = vpack.c.bf16 %v4067_v57, %v4066_v56 }
 0xe50   :  { %4618 = vmatprep.subr.bf16.mxu0 %v4617_v9 }
 0xe51   :  { %4479 = vmatmul.mubr.msk.f32.vlgmr.msra.gmra.mrb[46].mxu1 %vm268_vm4, %v2806_v61 }
 0xe53   :  { %4620 = vmatpush3.bf16.msra.mxu0 %v4617_v9 }
 0xe54   :  { %4630 = vmatprep.subr.bf16.mxu0 %v4629_v53 }
 0xebf   :  { %v2955_v62 = vpop.f32.mrb[40].mxu1 }
 0xec0   :  { %v4450_v63 = vpop.f32.mrb[41].mxu1 }
 0xec3   :  { %v2879_v0 = vpop.f32.mrb[20].mxu0 }
 0xec4   :  { %v4445_v1 = vpop.f32.mrb[21].mxu0 }
 0xf18   :  { %v3031_v10 = vpop.f32.mrb[22].mxu0 }
 0xf19   :  { %3417 = vrot.lane.b32.xlu0 %v3031_v10, %s4783_s0  ;;  %v4455_v11 = vpop.f32.mrb[23].mxu0 }
 0xf1c   :  { %v3107_v12 = vpop.f32.mrb[42].mxu1 }
 0xf1d   :  { %v3183_v13 = vpop.f32.mrb[24].mxu0  ;;  %3419 = vrot.lane.b32.xlu1 %v3107_v12, %s4783_s0  ;;  %v4460_v14 = vpop.f32.mrb[43].mxu1 }
 0xf1e   :  { %3425 = vrot.lane.b32.xlu0 %v3183_v13, %s5574_s28  ;;  %v4465_v15 = vpop.f32.mrb[25].mxu0 }
 0xf1f   :  { %v4052_v15 = vld [vmem:[%s5556_s6 + $0x1] ss:$0 sm:$0xff] }
 0xf20   :  { %v3259_v16 = vpop.f32.mrb[44].mxu1 }
 0xf21   :  { %v3335_v17 = vpop.f32.mrb[26].mxu0  ;;  %3427 = vrot.lane.b32.xlu1 %v3259_v16, %s5574_s28  ;;  %v4470_v18 = vpop.f32.mrb[45].mxu1  ;;  %s4787_s28 = smov [#allocation2]  }
 0xf22   :  { %3433 = vrot.lane.b32.xlu0 %v3335_v17, %s5575_s4  ;;  %v4475_v19 = vpop.f32.mrb[27].mxu0  ;;  %v4053_v17 = vld [vmem:[%s5557_s7 + $0x1] ss:$0 sm:$0xff] }
 0xf24   :  { %v3411_v48 = vpop.f32.mrb[46].mxu1 }
 0xf25   :  { %3435 = vrot.lane.b32.xlu1 %v3411_v48, %s5575_s4  ;;  %v4480_v52 = vpop.f32.mrb[47].mxu1  ;;  %s3960_s4 = sshll.u32 %s4787_s28, 4  ;;  %s3961_s4 = int_to_ptr.vmem [resolvable:$true] %s3960_s4 }
 0xf26   :  { %p4755_p1 = scmp.lt.s32.totalorder %s3961_s4, %s3961_s4 }
 0xf8b   :  { %v3418_v20 = vpop.permute.xlu0 %3417 }
 0xf8c   :  { %v3439_v23 = vsel %vm268_vm4, %v2879_v0, %v3418_v20 }
 0xf8f   :  { %v3420_v21 = vpop.permute.xlu1 %3419 }
 0xf90   :  { %v3426_v22 = vpop.permute.xlu0 %3425  ;;  %v3440_v26 = vsel %vm268_vm4, %v2955_v62, %v3420_v21 }
 0xf91   :  { %v3441_v38 = vsel %vm1605_vm5, %v3439_v23, %v3426_v22  ;;  %v4068_v23 = vld [vmem:[%s5562_s12 + $0x70] sm:$0xff] }
 0xf93   :  { %v3428_v24 = vpop.permute.xlu1 %3427 }
 0xf94   :  { %v3434_v39 = vpop.permute.xlu0 %3433  ;;  %v3442_v27 = vsel %vm1605_vm5, %v3440_v26, %v3428_v24  ;;  %v4069_v24 = vld [vmem:[%s5562_s12 + $0x78] sm:$0xff] }
 0xf95   :  { %v3443_v25 = vsel %vm1608_vm6, %v3441_v38, %v3434_v39  ;;  %v4641_v38 = vpack.c.bf16 %v4069_v24, %v4068_v23  ;;  %v4059_v39 = vld [vmem:[%s5561_s11 + $0x1] ss:$0 sm:$0xff] }
 0xf96   :  { %4489 = vmatprep.mubr.msk.f32.mxu0 %vm170_vm2, %v3443_v25 }
 0xf97   :  { %v3436_v28 = vpop.permute.xlu1 %3435 }
 0xf98   :  { %v3444_v29 = vsel %vm1608_vm6, %v3442_v27, %v3436_v28 }
 0xf99   :  { %4490 = vmatmul.mubr.msk.f32.vlgmr.msra.gmra.mrb[28].mxu0 %vm170_vm2, %v3444_v29 }
 0xf9a   :  { %4632 = vmatpush3.bf16.msra.mxu0 %v4629_v53 }
 0xf9b   :  { %4634 = vmatprep.subr.bf16.mxu0 %v4633_v55 }
 0xf9e   :  { %4636 = vmatpush3.bf16.msra.mxu0 %v4633_v55 }
 0xf9f   :  { %4638 = vmatprep.subr.bf16.mxu0 %v4637_v58 }
 0xfa2   :  { %4640 = vmatpush3.bf16.msra.mxu0 %v4637_v58 }
 0xfa3   :  { %4642 = vmatprep.subr.bf16.mxu0 %v4641_v38 }
 0xfa6   :  { %4644 = vmatpush3.bf16.msra.mxu0 %v4641_v38 }
0x106c   :  { %v4491_v31 = vpop.f32.mrb[28].mxu0 }
0x106d   :  { %v3536_v32 = vadd.f32 %v4491_v31, %v4047_v30  ;;  %v3530_v33 = vpop.f32.mrb[29].mxu0 }
0x106e   :  { %v3531_v34 = vadd.f32 %v4047_v30, %v3530_v33  ;;  %v4071_v30 = vld [vmem:[%s5563_s13 + $0x1] ss:$0 sm:$0xff] }
0x106f   :  { %v3540_v35 = vadd.f32 %v3536_v32, %v5245_v60  ;;  %v4054_v60 = vld [vmem:[%s5560_s10 + $0x20] sm:$0xff] }
0x1070   :  { %v3539_v4 = vadd.f32 %v3531_v34, %v5243_v59  ;;  %v4055_v59 = vld [vmem:[%s5560_s10 + $0x28] sm:$0xff] }
0x1071   :  { %v3548_v8 = vsel %vm170_vm2, %v3540_v35, 0.0  ;;  %v3554_v42 = vmul.f32 %v3540_v35, %v3540_v35  ;;  %v4621_v45 = vpack.c.bf16 %v4055_v59, %v4054_v60  ;;  %v3854_v60 = vld [vmem:[%s5564_s14] sm:$0xff]  ;;  %v3855_v59 = vld [vmem:[%s5564_s14 + $0x8] sm:$0xff] }
0x1072   :  { %3549 = vadd.xlane.f32.xlu1 %v3548_v8  ;;  %v3545_v36 = vsel %vm170_vm2, %v3539_v4, 0.0  ;;  %v3553_v37 = vmul.f32 %v3539_v4, %v3539_v4  ;;  %v4646_v46 = vpack.c.bf16 %v3855_v59, %v3854_v60 }
0x1073   :  { %3546 = vadd.xlane.f32.xlu0 %v3545_v36  ;;  %v3558_v43 = vsel %vm170_vm2, %v3554_v42, 0.0  ;;  %4622 = vmatprep.subr.bf16.mxu1 %v4621_v45 }
0x1074   :  { %v3555_v41 = vsel %vm170_vm2, %v3553_v37, 0.0  ;;  %4624 = vmatpush3.bf16.msra.mxu1 %v4621_v45  ;;  %v4786_v45 = vmov 0.0|0.0  }
0x1075   :  { %4626 = vmatprep.subr.bf16.mxu1 %v4625_v47 }
0x1077   :  { %3556 = vadd.xlane.f32.xlu0 %v3555_v41 }
0x1078   :  { %4628 = vmatpush3.bf16.msra.mxu1 %v4625_v47  ;;  %v3857_v47 = vld [vmem:[%s5564_s14 + $0x18] sm:$0xff] }
0x1079   :  { %4645 = vmatprep.subr.bf16.mxu1 %v4786_v45  ;;  %v4649_v49 = vpack.c.bf16 %v3857_v47, %v3856_v44 }
0x107b   :  { %3559 = vadd.xlane.f32.xlu0 %v3558_v43 }
0x10ff   :  { %v3550_v63 = vpop.xlane.xlu1 %3549 }
0x1100   :  { %v3547_v61 = vpop.xlane.xlu0 %3546  ;;  %v3552_v1 = vmul.f32 0.03125, %v3550_v63 }
0x1101   :  { %v3551_v62 = vmul.f32 0.03125, %v3547_v61 }
0x1102   :  { %v3564_v7 = vmul.f32 %v3552_v1, %v3552_v1  ;;  %v3568_v18 = vsub.f32 %v3540_v35, %v3552_v1 }
0x1103   :  { %v3563_v2 = vmul.f32 %v3551_v62, %v3551_v62  ;;  %v3567_v13 = vsub.f32 %v3539_v4, %v3551_v62 }
0x1104   :  { %v3557_v0 = vpop.xlane.xlu0 %3556 }
0x1105   :  { %v3561_v3 = vmul.f32 0.03125, %v3557_v0 }
0x1107   :  { %v3565_v5 = vsub.f32 %v3561_v3, %v3563_v2 }
0x1108   :  { %v3560_v6 = vpop.xlane.xlu0 %3559 }
0x1109   :  { %v3569_v9 = vadd.f32 1e-05, %v3565_v5  ;;  %v3562_v10 = vmul.f32 0.03125, %v3560_v6 }
0x110b   :  { %4738 = vrsqrt.f32 %v3569_v9  ;;  %v3566_v11 = vsub.f32 %v3562_v10, %v3564_v7  ;;  %v4076_v7 = vld [vmem:[%s5558_s8 + $0x1] ss:$0 sm:$0xff] }
0x110d   :  { %v3570_v12 = vadd.f32 1e-05, %v3566_v11 }
0x110f   :  { %4740 = vrsqrt.f32 %v3570_v12  ;;  %v4077_v12 = vld [vmem:[%s5559_s9 + $0x1] ss:$0 sm:$0xff] }
0x1115   :  { %v4739_v14 = vpop.eup %4738 }
0x1116   :  { %v3573_v16 = vmul.f32 %v4739_v14, %v3567_v13 }
0x1118   :  { %v3581_v19 = vmul.f32 %v4052_v15, %v3573_v16 }
0x1119   :  { %v4741_v48 = vpop.eup %4740 }
0x111a   :  { %v3574_v52 = vmul.f32 %v4741_v48, %v3568_v18  ;;  %v3589_v20 = vadd.f32 %v4053_v17, %v3581_v19 }
0x111c   :  { %v3582_v21 = vmul.f32 %v4052_v15, %v3574_v52  ;;  %4500 = vmatprep.mubr.msk.f32.mxu1 %vm170_vm2, %v3589_v20 }
0x111e   :  { %v3590_v22 = vadd.f32 %v4053_v17, %v3582_v21 }
0x1120   :  { %4501 = vmatmul.mubr.msk.f32.vlgmr.msra.gmra.mrb[48].mxu1 %vm170_vm2, %v3590_v22 }
0x1121   :  { %4530 = vmatprep.mubr.msk.f32.mxu1 %vm4777_vm3, %v4776_v40  ;;  %4647 = vmatpush3.bf16.msra.mxu1 %v4646_v46 }
0x1122   :  { %4648 = vmatprep.subr.bf16.mxu1 %v4786_v45 }
0x1125   :  { %4650 = vmatpush3.bf16.msra.mxu1 %v4649_v49 }
0x11f3   :  { %v4502_v25 = vpop.f32.mrb[48].mxu1 }
0x11f4   :  { %v3682_v26 = vadd.f32 %v4502_v25, %v4059_v39  ;;  %v3676_v27 = vpop.f32.mrb[49].mxu1 }
0x11f5   :  { %v3677_v28 = vadd.f32 %v4059_v39, %v3676_v27 }
0x11f6   :  { %v3686_v29 = vmax.f32 %v3682_v26, 0.0 }
0x11f7   :  { %v3685_v40 = vmax.f32 %v3677_v28, 0.0 }
0x11f9   :  { %4519 = vmatprep.mubr.msk.f32.mxu0 %vm1863_vm7, %v3685_v40 }
0x11fa   :  { %4520 = vmatmul.mubr.msk.f32.vlgmr.msra.gmra.mrb[30].mxu0 %vm1863_vm7, %v3686_v29  ;;  %v4078_v29 = vld [vmem:[%s5565_s15] ss:$0 sm:$0xff]  ;;  %s4750_s15 = scalar_lea.vmem %s3961_s4, 32 }
0x11fb   :  { %p4751_p0 = scmp.ne.s32.totalorder %s3961_s4, %s4750_s15  ;;  %p4756_p2 = scmp.lt.s32.totalorder %s4750_s15, %s4750_s15 }
0x11fd   :  { %p4757_p3 = por %p4756_p2, %p4755_p1 }
0x11ff   :  { %p4758_p4 = pnand %p4757_p3, %p4751_p0 }
0x12cd   :  { %v4521_v31 = vpop.f32.mrb[30].mxu0 }
0x12ce   :  { %v3782_v32 = vadd.f32 %v4521_v31, %v4071_v30  ;;  %v3776_v33 = vpop.f32.mrb[31].mxu0 }
0x12cf   :  { %v3777_v34 = vadd.f32 %v4071_v30, %v3776_v33 }
0x12d0   :  { %v3786_v35 = vadd.f32 %v3782_v32, %v3590_v22 }
0x12d1   :  { %v3785_v4 = vadd.f32 %v3777_v34, %v3589_v20 }
0x12d2   :  { %v3794_v8 = vsel %vm170_vm2, %v3786_v35, 0.0  ;;  %v3800_v36 = vmul.f32 %v3786_v35, %v3786_v35 }
0x12d3   :  { %3795 = vadd.xlane.f32.xlu0 %v3794_v8  ;;  %v3791_v37 = vsel %vm170_vm2, %v3785_v4, 0.0  ;;  %v3799_v41 = vmul.f32 %v3785_v4, %v3785_v4 }
0x12d4   :  { %3792 = vadd.xlane.f32.xlu1 %v3791_v37  ;;  %v3804_v42 = vsel %vm170_vm2, %v3800_v36, 0.0 }
0x12d5   :  { %v3801_v43 = vsel %vm170_vm2, %v3799_v41, 0.0 }
0x12d7   :  { %3805 = vadd.xlane.f32.xlu0 %v3804_v42 }
0x12d8   :  { %3802 = vadd.xlane.f32.xlu1 %v3801_v43 }
0x1360   :  { %v3796_v50 = vpop.xlane.xlu0 %3795 }
0x1361   :  { %v3798_v51 = vmul.f32 0.03125, %v3796_v50  ;;  %v3793_v53 = vpop.xlane.xlu1 %3792 }
0x1362   :  { %v3797_v54 = vmul.f32 0.03125, %v3793_v53 }
0x1363   :  { %v3810_v56 = vmul.f32 %v3798_v51, %v3798_v51  ;;  %v3814_v3 = vsub.f32 %v3786_v35, %v3798_v51 }
0x1364   :  { %v3806_v55 = vpop.xlane.xlu0 %3805  ;;  %v3809_v61 = vmul.f32 %v3797_v54, %v3797_v54  ;;  %v3813_v6 = vsub.f32 %v3785_v4, %v3797_v54 }
0x1365   :  { %v3808_v57 = vmul.f32 0.03125, %v3806_v55  ;;  %v3803_v58 = vpop.xlane.xlu1 %3802 }
0x1366   :  { %v3807_v62 = vmul.f32 0.03125, %v3803_v58 }
0x1367   :  { %v3812_v63 = vsub.f32 %v3808_v57, %v3810_v56 }
0x1368   :  { %v3811_v0 = vsub.f32 %v3807_v62, %v3809_v61 }
0x1369   :  { %v3816_v1 = vadd.f32 1e-05, %v3812_v63 }
0x136a   :  { %v3815_v2 = vadd.f32 1e-05, %v3811_v0 }
0x136b   :  { %4742 = vrsqrt.f32 %v3816_v1 }
0x136c   :  { %4744 = vrsqrt.f32 %v3815_v2 }
0x1375   :  { %v4743_v5 = vpop.eup %4742 }
0x1376   :  { %v4745_v9 = vpop.eup %4744  ;;  %v3820_v10 = vmul.f32 %v4743_v5, %v3814_v3 }
0x1377   :  { %v3819_v11 = vmul.f32 %v4745_v9, %v3813_v6 }
0x1378   :  { %v3828_v13 = vmul.f32 %v4076_v7, %v3820_v10 }
0x1379   :  { %v3827_v14 = vmul.f32 %v4076_v7, %v3819_v11 }
0x137a   :  { %v3836_v15 = vadd.f32 %v4077_v12, %v3828_v13 }
0x137b   :  { %v3835_v16 = vadd.f32 %v4077_v12, %v3827_v14 }
0x137c   :  { %v3844_v17 = vsel %vm170_vm2, %v3836_v15, 0.0 }
0x137d   :  { %v3837_v18 = vsel %vm170_vm2, %v3835_v16, 0.0  ;;  %v3845_v19 = vrot.slane %v3844_v17, 4 }
0x137e   :  { %v3838_v48 = vrot.slane %v3837_v18, 4 }
0x137f   :  { %v3846_v52 = vadd.f32 %v3845_v19, %v3844_v17 }
0x1380   :  { %v3839_v20 = vadd.f32 %v3838_v48, %v3837_v18 }
0x1381   :  { %v3847_v21 = vrot.slane %v3846_v52, 2 }
0x1382   :  { %v3840_v22 = vrot.slane %v3839_v20, 2 }
0x1383   :  { %v3848_v23 = vadd.f32 %v3847_v21, %v3846_v52 }
0x1384   :  { %v3841_v24 = vadd.f32 %v3840_v22, %v3839_v20 }
0x1385   :  { %v3849_v38 = vrot.slane %v3848_v23, 1 }
0x1386   :  { %v3842_v39 = vrot.slane %v3841_v24, 1 }
0x1387   :  { %v3850_v25 = vadd.f32 %v3849_v38, %v3848_v23 }
0x1388   :  { %v3843_v26 = vadd.f32 %v3842_v39, %v3841_v24 }
0x1389   :  { %v3853_v27 = vmul.f32 0.125, %v3850_v25 }
0x138a   :  { %v3852_v28 = vmul.f32 0.125, %v3843_v26 }
0x138c   :  { %v3868_v40 = vsel %vm3867_vm8, %v3853_v27, %v3852_v28 }
0x138d   :  { %4531 = vmatmul.mubr.msk.f32.vlgmr.msra.gmra.mrb[50].mxu1 %vm170_vm2, %v3868_v40 }
0x1460   :  { %v3937_v30 = vpop.f32.mrb[50].mxu1 }
0x1461   :  { %v3938_v31 = vadd.f32 %v4078_v29, %v3937_v30  ;;  %v4532_v32 = vpop.f32.mrb[51].mxu1 }
0x1463   :  { %v3942_v33 = vsel %vm3941_vm9, %v3938_v31, -inf }
0x1464   :  { %3943 = vmax.xlane.f32.xlu1 %v3942_v33 }
0x14f1   :  { %v3944_v34 = vpop.xlane.xlu1 %3943 }
0x14f2   :  { %v3945_v35 = vsub.f32 %v3938_v31, %v3944_v34 }
0x14f4   :  { %v3946_v4 = vmul.f32 1.442695, %v3945_v35 }
0x14f6   :  { %4746 = vpow2.f32 %v3946_v4 }
0x1500   :  { %v4747_v8 = vpop.eup %4746 }
0x1501   :  { %v3948_v36 = vsel %vm3941_vm9, %v4747_v8, 0.0 }
0x1502   :  { %3949 = vadd.xlane.f32.xlu0 %v3948_v36 }
0x158f   :  { %v3950_v37 = vpop.xlane.xlu0 %3949 }
0x1590   :  { %4748 = vrcp.f32 %v3950_v37 }
0x159a   :  { %v4749_v41 = vpop.eup %4748 }
0x159b   :  { %v3952_v42 = vmul.f32 %v4749_v41, %v4747_v8 }
0x159d   :  { %3953 = vst.msk [vmem:[#allocation2] sm:$0x3] %vm3941_vm9, %v3952_v42 }
0x159e   :  { %4761 = shalt.err (!%p4758_p4)
}
0x159f   :  { %s4762_s5 = scalar_lea.hbm %s5566_s16, 32 }
0x15a0   :  { %p4763_p5 = scmp.ne.s32.totalorder %s5566_s16, %s4762_s5  ;;  %p4766_p6 = scmp.lt.u32.totalorder %s4762_s5, %s5566_s16 }
0x15a2   :  { %p4768_p7 = pnand %p4766_p6, %p4763_p5 }
0x15a4   :  { %4771 = shalt.err (!%p4768_p7)
}
0x15a5   :  { %3963 = dma.vmem_to_hbm [thread:$0]  %s3961_s4, 32, %s5566_s16, [#allocation3]  }
0x15a6   :  { %4772 = dma.done.wait [#allocation3], 32  }
0x15a7   :  { %4773 = vsyncadd [#allocation3], 4294967264 }
0x15a8   :  { %3967 = vsyncpa [#allocation3], 1 }

</bundles_post_ra>
